<compile_context>
chip_gen: v5e
topology: v5e:2x2
jax: 0.10.0
libtpu: 0.0.40
codegen_flags: <defaults>
</compile_context>

<pallas_src>
import math
import functools

import jax
import jax.numpy as jnp
from jax.experimental import pallas as pl
from jax.experimental.pallas import tpu as pltpu


# ----------------------------- tile / VMEM helpers -----------------------------

def _round_up(n, m):
    return ((n + m - 1) // m) * m


def _vmem_limit_bytes():
    """Generation-aware scoped-VMEM limit (v7x only has 64 MiB physical VMEM)."""
    try:
        kind = jax.devices()[0].device_kind.lower()
    except Exception:
        kind = ""
    if "v7" in kind:
        return 48 * 1024 * 1024
    return 100 * 1024 * 1024


def _pick_divisor_tile(n, cap):
    """Largest multiple-of-16 (then -8) divisor of n that is <= cap; falls back to n."""
    for mult in (16, 8):
        t = min(n, cap)
        t -= t % mult
        while t >= mult:
            if n % t == 0:
                return t
            t -= mult
    return n


def _pick_ffn_row_tile(n, d, ff, vmem_limit):
    """Row tile for the FFN kernel, sized against VMEM remaining after the
    single-buffered weights; capped at 1024 (512 on the 64 MiB-VMEM v7x)."""
    cap = 512 if vmem_limit < 64 * 1024 * 1024 else 1024
    weight_bytes = 2 * (2 * d * ff) + 4 * (ff + 3 * d)          # bf16 W1+W2, f32 biases/LN
    per_row = 2 * 2 * (2 * d) + 4 * ff + 8 * d                  # dbl-buffered bf16 I/O + f32 h, y
    budget = max(vmem_limit - weight_bytes, 2 * 1024 * 1024)
    tm = min(cap, budget // per_row, _round_up(n, 16))
    tm = max(16, tm - (tm % 16))
    return int(tm)


# ----------------------------- Pallas kernels -----------------------------

def _attn_ln_kernel(xq_ref, xs_ref, wq_ref, bq_ref, wkv_ref, bv_ref,
                    wo_ref, bo_ref, g_ref, beta_ref, o_ref, *, nheads, eps):
    """Fused: Q/KV proj -> per-head attention (TQ x S block) -> out proj -> +res -> LN1.

    Shapes (per grid step = one (batch, query-tile)):
      xq_ref:  (1, TQ, D) bf16   query rows
      xs_ref:  (1, S,  D) bf16   full sequence (keys / values source)
      wq_ref:  (D, D)  bf16 (scale folded in)     bq_ref: (1, D) f32 (scaled)
      wkv_ref: (D, 2D) bf16  [K | V] columns      bv_ref: (1, D) f32
      wo_ref:  (D, D)  bf16                       bo/g/beta: (1, D) f32
      o_ref:   (1, TQ, D) bf16
    """
    xq = xq_ref[0]                                   # (TQ, D) bf16
    xs = xs_ref[0]                                   # (S,  D) bf16
    D = xq.shape[-1]
    hd = D // nheads

    # Fused, D-wide projections (MXU-friendly: K = D, N = D / 2D; lane-dense outputs).
    q = jnp.dot(xq, wq_ref[...], preferred_element_type=jnp.float32) + bq_ref[...]
    kv = jnp.dot(xs, wkv_ref[...], preferred_element_type=jnp.float32)
    k = kv[:, :D]
    v = kv[:, D:] + bv_ref[...]

    qb = q.astype(jnp.bfloat16)
    kb = k.astype(jnp.bfloat16)
    vb = v.astype(jnp.bfloat16)

    # Per-head attention over a bounded (TQ, S) f32 score block (one head live at a time).
    heads = []
    for h in range(nheads):                          # static unroll; per-head live set is small
        lo, hi = h * hd, (h + 1) * hd
        s = jax.lax.dot_general(qb[:, lo:hi], kb[:, lo:hi],
                                (((1,), (1,)), ((), ())),
                                preferred_element_type=jnp.float32)      # (TQ, S)
        s = s - jnp.max(s, axis=-1, keepdims=True)
        p = jnp.exp(s)
        p = p * pl.reciprocal(jnp.sum(p, axis=-1, keepdims=True), approx=True)
        heads.append(jnp.dot(p.astype(jnp.bfloat16), vb[:, lo:hi],
                             preferred_element_type=jnp.float32).astype(jnp.bfloat16))
    attn = jnp.concatenate(heads, axis=-1)           # (TQ, D) bf16 head concat, lane-dense

    # Single D-wide output projection (replaces H rank-hd partial matmuls).
    attn_out = jnp.dot(attn, wo_ref[...], preferred_element_type=jnp.float32) + bo_ref[...]

    # residual + LayerNorm1 in f32 (biased variance, eps=1e-5 like PyTorch).
    y = xq.astype(jnp.float32) + attn_out
    mu = jnp.mean(y, axis=-1, keepdims=True)
    var = jnp.mean((y - mu) ** 2, axis=-1, keepdims=True)
    o_ref[0] = ((y - mu) * jax.lax.rsqrt(var + eps) * g_ref[...]
                + beta_ref[...]).astype(o_ref.dtype)


def _ffn_ln_kernel(x_ref, w1_ref, b1_ref, w2_ref, b2_ref, g_ref, beta_ref,
                   o_ref, *, eps):
    """Fused: FF1 + ReLU + FF2 + residual + LayerNorm2 for one row tile of tokens."""
    x = x_ref[...]                                                # (TM, D) bf16
    h = jnp.dot(x, w1_ref[...], preferred_element_type=jnp.float32) + b1_ref[...]
    h = jnp.maximum(h, 0.0)
    f = jnp.dot(h.astype(jnp.bfloat16), w2_ref[...],
                preferred_element_type=jnp.float32) + b2_ref[...]

    y = x.astype(jnp.float32) + f
    mu = jnp.mean(y, axis=-1, keepdims=True)
    var = jnp.mean((y - mu) ** 2, axis=-1, keepdims=True)
    o_ref[...] = ((y - mu) * jax.lax.rsqrt(var + eps) * g_ref[...]
                  + beta_ref[...]).astype(o_ref.dtype)


# ------------------------------- wrappers ----------------------------------

def encoder_layer(xb, p, nheads, eps=1e-5):
    """One post-norm TransformerEncoderLayer. xb: (B, S, D) bf16 -> (B, S, D) bf16."""
    B, S, D = xb.shape
    FF = p["w1"].shape[1]
    vmem_limit = _vmem_limit_bytes()
    # Constant-index (weight/bias/LN) blocks: single-buffered, stay VMEM-resident.
    const = dict(pipeline_mode=pl.Buffered(buffer_count=1))

    # --- Kernel A: attention block + add&norm1, grid over (batch, query tiles) ---
    cap_q = 256 if vmem_limit < 64 * 1024 * 1024 else 512
    TQ = _pick_divisor_tile(S, cap_q)
    x1 = pl.pallas_call(
        functools.partial(_attn_ln_kernel, nheads=nheads, eps=eps),
        out_shape=jax.ShapeDtypeStruct((B, S, D), jnp.bfloat16),
        grid=(B, S // TQ),
        in_specs=[
            pl.BlockSpec((1, TQ, D), lambda b, q: (b, q, 0)),            # query tile
            pl.BlockSpec((1, S, D), lambda b, q: (b, 0, 0)),             # full seq for K/V
            pl.BlockSpec((D, D), lambda b, q: (0, 0), **const),          # Wq (scaled)
            pl.BlockSpec((1, D), lambda b, q: (0, 0), **const),          # bq (scaled)
            pl.BlockSpec((D, 2 * D), lambda b, q: (0, 0), **const),      # Wkv
            pl.BlockSpec((1, D), lambda b, q: (0, 0), **const),          # bv
            pl.BlockSpec((D, D), lambda b, q: (0, 0), **const),          # Wo
            pl.BlockSpec((1, D), lambda b, q: (0, 0), **const),          # bo
            pl.BlockSpec((1, D), lambda b, q: (0, 0), **const),          # ln1 gamma
            pl.BlockSpec((1, D), lambda b, q: (0, 0), **const),          # ln1 beta
        ],
        out_specs=pl.BlockSpec((1, TQ, D), lambda b, q: (b, q, 0)),
        compiler_params=pltpu.CompilerParams(
            dimension_semantics=("parallel", "parallel"),
            vmem_limit_bytes=vmem_limit),
    )(xb, xb, p["wq"], p["bq"], p["wkv"], p["bv"],
      p["wo"], p["bo"], p["ln1_g"], p["ln1_b"])

    # --- Kernel B: feed-forward block + add&norm2, tiled over token rows ---
    N = B * S
    TM = _pick_ffn_row_tile(N, D, FF, vmem_limit)
    Np = _round_up(N, TM)
    x1f = x1.reshape(N, D)
    if Np != N:
        x1f = jnp.pad(x1f, ((0, Np - N), (0, 0)))                        # zero-row tail
    x2 = pl.pallas_call(
        functools.partial(_ffn_ln_kernel, eps=eps),
        out_shape=jax.ShapeDtypeStruct((Np, D), jnp.bfloat16),
        grid=(Np // TM,),
        in_specs=[
            pl.BlockSpec((TM, D), lambda i: (i, 0)),
            pl.BlockSpec((D, FF), lambda i: (0, 0), **const),            # W1
            pl.BlockSpec((1, FF), lambda i: (0, 0), **const),            # b1
            pl.BlockSpec((FF, D), lambda i: (0, 0), **const),            # W2
            pl.BlockSpec((1, D), lambda i: (0, 0), **const),             # b2
            pl.BlockSpec((1, D), lambda i: (0, 0), **const),             # ln2 gamma
            pl.BlockSpec((1, D), lambda i: (0, 0), **const),             # ln2 beta
        ],
        out_specs=pl.BlockSpec((TM, D), lambda i: (i, 0)),
        compiler_params=pltpu.CompilerParams(
            dimension_semantics=("parallel",),
            vmem_limit_bytes=vmem_limit),
    )(x1f, p["w1"], p["b1"], p["w2"], p["b2"], p["ln2_g"], p["ln2_b"])

    return x2[:N].reshape(B, S, D)


def transformer_encoder(x, layer_params, nheads):
    """x: (S, B, D) f32 (PyTorch batch_first=False layout). Returns (S, B, D) f32."""
    xb = jnp.transpose(x, (1, 0, 2)).astype(jnp.bfloat16)   # bf16 activation streaming
    for p in layer_params:
        xb = encoder_layer(xb, p, nheads)
    return jnp.transpose(xb.astype(jnp.float32), (1, 0, 2))


# ----------------------------- parameter init -------------------------------

def init_layer_params(key, d_model, nheads, ff_dim):
    """Deterministic init; weights stored bf16 in kernel-friendly, fused layouts.
    Scale 1/sqrt(hd) is folded into Wq/bq; the K bias is dropped (softmax rows are
    shift-invariant, so it never changes the output)."""
    D, H, FF = d_model, nheads, ff_dim
    assert D % H == 0
    hd = D // H
    scale = 1.0 / math.sqrt(hd)
    ks = jax.random.split(key, 8)

    def u(k, shape, fan_in):
        bound = 1.0 / math.sqrt(fan_in)
        return jax.random.uniform(k, shape, jnp.float32, -bound, bound)

    in_proj_w = u(ks[0], (D, 3 * D), D)      # y = x @ W layout; columns = [q | k | v]
    in_proj_b = u(ks[1], (3 * D,), D)
    out_w = u(ks[2], (D, D), D)
    out_b = u(ks[3], (D,), D)
    ff1_w = u(ks[4], (D, FF), D)
    ff1_b = u(ks[5], (FF,), D)
    ff2_w = u(ks[6], (FF, D), FF)
    ff2_b = u(ks[7], (D,), FF)

    wq = in_proj_w[:, :D] * scale
    bq = in_proj_b[:D] * scale
    wk = in_proj_w[:, D:2 * D]
    wv = in_proj_w[:, 2 * D:]
    bv = in_proj_b[2 * D:]

    return dict(
        wq=wq.astype(jnp.bfloat16), bq=bq.reshape(1, D),
        wkv=jnp.concatenate([wk, wv], axis=1).astype(jnp.bfloat16),   # (D, 2D)
        bv=bv.reshape(1, D),
        wo=out_w.astype(jnp.bfloat16), bo=out_b.reshape(1, D),
        w1=ff1_w.astype(jnp.bfloat16), b1=ff1_b.reshape(1, FF),
        w2=ff2_w.astype(jnp.bfloat16), b2=ff2_b.reshape(1, D),
        ln1_g=jnp.ones((1, D), jnp.float32), ln1_b=jnp.zeros((1, D), jnp.float32),
        ln2_g=jnp.ones((1, D), jnp.float32), ln2_b=jnp.zeros((1, D), jnp.float32),
    )


# ---------------------------------- main -----------------------------------

if __name__ == "__main__":
    # Small, module-consistent shapes: seq=8, batch=2, d_model=32, nheads=4, ff=64, nlayers=2.
    S, B, D, H, FF, L = 8, 2, 32, 4, 64, 2

    key = jax.random.PRNGKey(0)
    kx, kp = jax.random.split(key)
    x = jax.random.normal(kx, (S, B, D), jnp.float32)

    layer_keys = jax.random.split(kp, L)
    params = [init_layer_params(k, D, H, FF) for k in layer_keys]

    fwd = jax.jit(functools.partial(transformer_encoder, nheads=H))
    out = jax.block_until_ready(fwd(x, params))

    assert out.shape == (S, B, D) and out.dtype == jnp.float32
    assert bool(jnp.all(jnp.isfinite(out)))
    print("KERNEL_OK")
</pallas_src>

<mosaic_0001>
module attributes {stable_mosaic.version = 11 : i64} {
  func.func @_ffn_ln_kernel(%arg0: i32, %arg1: memref<16x32xbf16, #tpu.memory_space<vmem>>, %arg2: memref<32x64xbf16, #tpu.memory_space<vmem>>, %arg3: memref<1x64xf32, #tpu.memory_space<vmem>>, %arg4: memref<64x32xbf16, #tpu.memory_space<vmem>>, %arg5: memref<1x32xf32, #tpu.memory_space<vmem>>, %arg6: memref<1x32xf32, #tpu.memory_space<vmem>>, %arg7: memref<1x32xf32, #tpu.memory_space<vmem>>, %arg8: memref<16x32xbf16, #tpu.memory_space<vmem>>) attributes {dimension_semantics = [#tpu.dimension_semantics<parallel>], iteration_bounds = array<i64: 1>, scalar_prefetch = 0 : i64, scratch_operands = 0 : i64, tpu.core_type = #tpu.core_type<tc>, window_params = [{transform_indices = @transform_0, window_bounds = array<i64: 16, 32>}, {pipeline_mode = #tpu.pipeline_mode<synchronous>, transform_indices = @transform_1, window_bounds = array<i64: 32, 64>}, {pipeline_mode = #tpu.pipeline_mode<synchronous>, transform_indices = @transform_2, window_bounds = array<i64: 1, 64>}, {pipeline_mode = #tpu.pipeline_mode<synchronous>, transform_indices = @transform_3, window_bounds = array<i64: 64, 32>}, {pipeline_mode = #tpu.pipeline_mode<synchronous>, transform_indices = @transform_4, window_bounds = array<i64: 1, 32>}, {pipeline_mode = #tpu.pipeline_mode<synchronous>, transform_indices = @transform_5, window_bounds = array<i64: 1, 32>}, {pipeline_mode = #tpu.pipeline_mode<synchronous>, transform_indices = @transform_6, window_bounds = array<i64: 1, 32>}, {transform_indices = @transform_7, window_bounds = array<i64: 16, 32>}]} {
    %c0 = arith.constant 0 : index
    %c0_0 = arith.constant 0 : index
    %0 = vector.load %arg1[%c0, %c0_0] : memref<16x32xbf16, #tpu.memory_space<vmem>>, vector<16x32xbf16>
    %c0_1 = arith.constant 0 : index
    %c0_2 = arith.constant 0 : index
    %1 = vector.load %arg2[%c0_1, %c0_2] : memref<32x64xbf16, #tpu.memory_space<vmem>>, vector<32x64xbf16>
    %cst = arith.constant dense<0.000000e+00> : vector<16x64xf32>
    %2 = tpu.matmul %0, %1, %cst {dimension_numbers = #tpu.dot_dimension_numbers<[1], [0], [0], [1], [0, 0, 1, 1], [], []>} : vector<16x32xbf16>, vector<32x64xbf16>, vector<16x64xf32> -> vector<16x64xf32>
    %c0_3 = arith.constant 0 : index
    %c0_4 = arith.constant 0 : index
    %3 = vector.load %arg3[%c0_3, %c0_4] : memref<1x64xf32, #tpu.memory_space<vmem>>, vector<1x64xf32>
    %4 = vector.broadcast %3 : vector<1x64xf32> to vector<16x64xf32>
    %5 = arith.addf %2, %4 : vector<16x64xf32>
    %cst_5 = arith.constant 0.000000e+00 : f32
    %6 = vector.broadcast %cst_5 : f32 to vector<16x64xf32>
    %7 = arith.maximumf %5, %6 : vector<16x64xf32>
    %8 = arith.truncf %7 : vector<16x64xf32> to vector<16x64xbf16>
    %c0_6 = arith.constant 0 : index
    %c0_7 = arith.constant 0 : index
    %9 = vector.load %arg4[%c0_6, %c0_7] : memref<64x32xbf16, #tpu.memory_space<vmem>>, vector<64x32xbf16>
    %cst_8 = arith.constant dense<0.000000e+00> : vector<16x32xf32>
    %10 = tpu.matmul %8, %9, %cst_8 {dimension_numbers = #tpu.dot_dimension_numbers<[1], [0], [0], [1], [0, 0, 1, 1], [], []>} : vector<16x64xbf16>, vector<64x32xbf16>, vector<16x32xf32> -> vector<16x32xf32>
    %c0_9 = arith.constant 0 : index
    %c0_10 = arith.constant 0 : index
    %11 = vector.load %arg5[%c0_9, %c0_10] : memref<1x32xf32, #tpu.memory_space<vmem>>, vector<1x32xf32>
    %12 = vector.broadcast %11 : vector<1x32xf32> to vector<16x32xf32>
    %13 = arith.addf %10, %12 : vector<16x32xf32>
    %14 = arith.extf %0 : vector<16x32xbf16> to vector<16x32xf32>
    %15 = arith.addf %14, %13 : vector<16x32xf32>
    %cst_11 = arith.constant dense<0.000000e+00> : vector<16xf32>
    %16 = vector.multi_reduction <add>, %15, %cst_11 [1] : vector<16x32xf32> to vector<16xf32>
    %17 = vector.shape_cast %16 : vector<16xf32> to vector<16x1xf32>
    %cst_12 = arith.constant 3.200000e+01 : f32
    %18 = vector.broadcast %cst_12 : f32 to vector<16x1xf32>
    %19 = arith.divf %17, %18 : vector<16x1xf32>
    %20 = vector.broadcast %19 : vector<16x1xf32> to vector<16x32xf32>
    %21 = arith.subf %15, %20 : vector<16x32xf32>
    %22 = arith.mulf %21, %21 : vector<16x32xf32>
    %cst_13 = arith.constant dense<0.000000e+00> : vector<16xf32>
    %23 = vector.multi_reduction <add>, %22, %cst_13 [1] : vector<16x32xf32> to vector<16xf32>
    %24 = vector.shape_cast %23 : vector<16xf32> to vector<16x1xf32>
    %cst_14 = arith.constant 3.200000e+01 : f32
    %25 = vector.broadcast %cst_14 : f32 to vector<16x1xf32>
    %26 = arith.divf %24, %25 : vector<16x1xf32>
    %27 = vector.broadcast %19 : vector<16x1xf32> to vector<16x32xf32>
    %28 = arith.subf %15, %27 : vector<16x32xf32>
    %cst_15 = arith.constant 9.99999974E-6 : f32
    %29 = vector.broadcast %cst_15 : f32 to vector<16x1xf32>
    %30 = arith.addf %26, %29 : vector<16x1xf32>
    %31 = math.rsqrt %30 : vector<16x1xf32>
    %32 = vector.broadcast %31 : vector<16x1xf32> to vector<16x32xf32>
    %33 = arith.mulf %28, %32 : vector<16x32xf32>
    %c0_16 = arith.constant 0 : index
    %c0_17 = arith.constant 0 : index
    %34 = vector.load %arg6[%c0_16, %c0_17] : memref<1x32xf32, #tpu.memory_space<vmem>>, vector<1x32xf32>
    %35 = vector.broadcast %34 : vector<1x32xf32> to vector<16x32xf32>
    %36 = arith.mulf %33, %35 : vector<16x32xf32>
    %c0_18 = arith.constant 0 : index
    %c0_19 = arith.constant 0 : index
    %37 = vector.load %arg7[%c0_18, %c0_19] : memref<1x32xf32, #tpu.memory_space<vmem>>, vector<1x32xf32>
    %38 = vector.broadcast %37 : vector<1x32xf32> to vector<16x32xf32>
    %39 = arith.addf %36, %38 : vector<16x32xf32>
    %40 = arith.truncf %39 : vector<16x32xf32> to vector<16x32xbf16>
    %c0_20 = arith.constant 0 : index
    %c0_21 = arith.constant 0 : index
    %41 = vector.load %arg8[%c0_20, %c0_21] : memref<16x32xbf16, #tpu.memory_space<vmem>>, vector<16x32xbf16>
    tpu.vector_store %arg8[%c0_20, %c0_21], %40 {strides = array<i32>} : memref<16x32xbf16, #tpu.memory_space<vmem>>, vector<16x32xbf16>,
    return
  }
  func.func @transform_0(%arg0: i32) -> (i32, i32) {
    %c0_i32 = arith.constant 0 : i32
    %c0_i32_0 = arith.constant 0 : i32
    return %arg0, %c0_i32 : i32, i32
  }
  func.func @transform_1(%arg0: i32) -> (i32, i32) {
    %c0_i32 = arith.constant 0 : i32
    %c0_i32_0 = arith.constant 0 : i32
    %c0_i32_1 = arith.constant 0 : i32
    return %c0_i32, %c0_i32_0 : i32, i32
  }
  func.func @transform_2(%arg0: i32) -> (i32, i32) {
    %c0_i32 = arith.constant 0 : i32
    %c0_i32_0 = arith.constant 0 : i32
    %c0_i32_1 = arith.constant 0 : i32
    return %c0_i32, %c0_i32_0 : i32, i32
  }
  func.func @transform_3(%arg0: i32) -> (i32, i32) {
    %c0_i32 = arith.constant 0 : i32
    %c0_i32_0 = arith.constant 0 : i32
    %c0_i32_1 = arith.constant 0 : i32
    return %c0_i32, %c0_i32_0 : i32, i32
  }
  func.func @transform_4(%arg0: i32) -> (i32, i32) {
    %c0_i32 = arith.constant 0 : i32
    %c0_i32_0 = arith.constant 0 : i32
    %c0_i32_1 = arith.constant 0 : i32
    return %c0_i32, %c0_i32_0 : i32, i32
  }
  func.func @transform_5(%arg0: i32) -> (i32, i32) {
    %c0_i32 = arith.constant 0 : i32
    %c0_i32_0 = arith.constant 0 : i32
    %c0_i32_1 = arith.constant 0 : i32
    return %c0_i32, %c0_i32_0 : i32, i32
  }
  func.func @transform_6(%arg0: i32) -> (i32, i32) {
    %c0_i32 = arith.constant 0 : i32
    %c0_i32_0 = arith.constant 0 : i32
    %c0_i32_1 = arith.constant 0 : i32
    return %c0_i32, %c0_i32_0 : i32, i32
  }
  func.func @transform_7(%arg0: i32) -> (i32, i32) {
    %c0_i32 = arith.constant 0 : i32
    %c0_i32_0 = arith.constant 0 : i32
    return %arg0, %c0_i32 : i32, i32
  }
}

module attributes {stable_mosaic.version = 11 : i64} {
  func.func @_attn_ln_kernel(%arg0: i32, %arg1: i32, %arg2: memref<1x8x32xbf16, #tpu.memory_space<vmem>>, %arg3: memref<1x8x32xbf16, #tpu.memory_space<vmem>>, %arg4: memref<32x32xbf16, #tpu.memory_space<vmem>>, %arg5: memref<1x32xf32, #tpu.memory_space<vmem>>, %arg6: memref<32x64xbf16, #tpu.memory_space<vmem>>, %arg7: memref<1x32xf32, #tpu.memory_space<vmem>>, %arg8: memref<32x32xbf16, #tpu.memory_space<vmem>>, %arg9: memref<1x32xf32, #tpu.memory_space<vmem>>, %arg10: memref<1x32xf32, #tpu.memory_space<vmem>>, %arg11: memref<1x32xf32, #tpu.memory_space<vmem>>, %arg12: memref<1x8x32xbf16, #tpu.memory_space<vmem>>) attributes {dimension_semantics = [#tpu.dimension_semantics<parallel>, #tpu.dimension_semantics<parallel>], iteration_bounds = array<i64: 2, 1>, scalar_prefetch = 0 : i64, scratch_operands = 0 : i64, tpu.core_type = #tpu.core_type<tc>, window_params = [{transform_indices = @transform_0, window_bounds = array<i64: 1, 8, 32>}, {transform_indices = @transform_1, window_bounds = array<i64: 1, 8, 32>}, {pipeline_mode = #tpu.pipeline_mode<synchronous>, transform_indices = @transform_2, window_bounds = array<i64: 32, 32>}, {pipeline_mode = #tpu.pipeline_mode<synchronous>, transform_indices = @transform_3, window_bounds = array<i64: 1, 32>}, {pipeline_mode = #tpu.pipeline_mode<synchronous>, transform_indices = @transform_4, window_bounds = array<i64: 32, 64>}, {pipeline_mode = #tpu.pipeline_mode<synchronous>, transform_indices = @transform_5, window_bounds = array<i64: 1, 32>}, {pipeline_mode = #tpu.pipeline_mode<synchronous>, transform_indices = @transform_6, window_bounds = array<i64: 32, 32>}, {pipeline_mode = #tpu.pipeline_mode<synchronous>, transform_indices = @transform_7, window_bounds = array<i64: 1, 32>}, {pipeline_mode = #tpu.pipeline_mode<synchronous>, transform_indices = @transform_8, window_bounds = array<i64: 1, 32>}, {pipeline_mode = #tpu.pipeline_mode<synchronous>, transform_indices = @transform_9, window_bounds = array<i64: 1, 32>}, {transform_indices = @transform_10, window_bounds = array<i64: 1, 8, 32>}]} {
    %c0 = arith.constant 0 : index
    %c0_0 = arith.constant 0 : index
    %c0_1 = arith.constant 0 : index
    %0 = vector.load %arg2[%c0, %c0_0, %c0_1] : memref<1x8x32xbf16, #tpu.memory_space<vmem>>, vector<1x8x32xbf16>
    %1 = vector.shape_cast %0 : vector<1x8x32xbf16> to vector<8x32xbf16>
    %c0_2 = arith.constant 0 : index
    %c0_3 = arith.constant 0 : index
    %c0_4 = arith.constant 0 : index
    %2 = vector.load %arg3[%c0_2, %c0_3, %c0_4] : memref<1x8x32xbf16, #tpu.memory_space<vmem>>, vector<1x8x32xbf16>
    %3 = vector.shape_cast %2 : vector<1x8x32xbf16> to vector<8x32xbf16>
    %c0_5 = arith.constant 0 : index
    %c0_6 = arith.constant 0 : index
    %4 = vector.load %arg4[%c0_5, %c0_6] : memref<32x32xbf16, #tpu.memory_space<vmem>>, vector<32x32xbf16>
    %cst = arith.constant dense<0.000000e+00> : vector<8x32xf32>
    %5 = tpu.matmul %1, %4, %cst {dimension_numbers = #tpu.dot_dimension_numbers<[1], [0], [0], [1], [0, 0, 1, 1], [], []>} : vector<8x32xbf16>, vector<32x32xbf16>, vector<8x32xf32> -> vector<8x32xf32>
    %c0_7 = arith.constant 0 : index
    %c0_8 = arith.constant 0 : index
    %6 = vector.load %arg5[%c0_7, %c0_8] : memref<1x32xf32, #tpu.memory_space<vmem>>, vector<1x32xf32>
    %7 = vector.broadcast %6 : vector<1x32xf32> to vector<8x32xf32>
    %8 = arith.addf %5, %7 : vector<8x32xf32>
    %c0_9 = arith.constant 0 : index
    %c0_10 = arith.constant 0 : index
    %9 = vector.load %arg6[%c0_9, %c0_10] : memref<32x64xbf16, #tpu.memory_space<vmem>>, vector<32x64xbf16>
    %cst_11 = arith.constant dense<0.000000e+00> : vector<8x64xf32>
    %10 = tpu.matmul %3, %9, %cst_11 {dimension_numbers = #tpu.dot_dimension_numbers<[1], [0], [0], [1], [0, 0, 1, 1], [], []>} : vector<8x32xbf16>, vector<32x64xbf16>, vector<8x64xf32> -> vector<8x64xf32>
    %11 = vector.extract_strided_slice %10 {offsets = [0, 0], sizes = [8, 32], strides = [1, 1]} : vector<8x64xf32> to vector<8x32xf32>
    %12 = vector.extract_strided_slice %10 {offsets = [0, 32], sizes = [8, 32], strides = [1, 1]} : vector<8x64xf32> to vector<8x32xf32>
    %c0_12 = arith.constant 0 : index
    %c0_13 = arith.constant 0 : index
    %13 = vector.load %arg7[%c0_12, %c0_13] : memref<1x32xf32, #tpu.memory_space<vmem>>, vector<1x32xf32>
    %14 = vector.broadcast %13 : vector<1x32xf32> to vector<8x32xf32>
    %15 = arith.addf %12, %14 : vector<8x32xf32>
    %16 = arith.truncf %8 : vector<8x32xf32> to vector<8x32xbf16>
    %17 = arith.truncf %11 : vector<8x32xf32> to vector<8x32xbf16>
    %18 = arith.truncf %15 : vector<8x32xf32> to vector<8x32xbf16>
    %19 = vector.extract_strided_slice %16 {offsets = [0, 0], sizes = [8, 8], strides = [1, 1]} : vector<8x32xbf16> to vector<8x8xbf16>
    %20 = vector.extract_strided_slice %17 {offsets = [0, 0], sizes = [8, 8], strides = [1, 1]} : vector<8x32xbf16> to vector<8x8xbf16>
    %cst_14 = arith.constant dense<0.000000e+00> : vector<8x8xf32>
    %21 = tpu.matmul %19, %20, %cst_14 {dimension_numbers = #tpu.dot_dimension_numbers<[1], [1], [0], [0], [0, 0, 1, 0], [], []>} : vector<8x8xbf16>, vector<8x8xbf16>, vector<8x8xf32> -> vector<8x8xf32>
    %cst_15 = arith.constant dense<0xFF800000> : vector<8xf32>
    %22 = vector.multi_reduction <maximumf>, %21, %cst_15 [1] : vector<8x8xf32> to vector<8xf32>
    %23 = vector.shape_cast %22 : vector<8xf32> to vector<8x1xf32>
    %24 = vector.broadcast %23 : vector<8x1xf32> to vector<8x8xf32>
    %25 = arith.subf %21, %24 : vector<8x8xf32>
    %26 = math.exp %25 : vector<8x8xf32>
    %cst_16 = arith.constant dense<0.000000e+00> : vector<8xf32>
    %27 = vector.multi_reduction <add>, %26, %cst_16 [1] : vector<8x8xf32> to vector<8xf32>
    %28 = vector.shape_cast %27 : vector<8xf32> to vector<8x1xf32>
    %29 = tpu.reciprocal %28 {approx = true} : vector<8x1xf32> -> vector<8x1xf32>
    %30 = vector.broadcast %29 : vector<8x1xf32> to vector<8x8xf32>
    %31 = arith.mulf %26, %30 : vector<8x8xf32>
    %32 = arith.truncf %31 : vector<8x8xf32> to vector<8x8xbf16>
    %33 = vector.extract_strided_slice %18 {offsets = [0, 0], sizes = [8, 8], strides = [1, 1]} : vector<8x32xbf16> to vector<8x8xbf16>
    %cst_17 = arith.constant dense<0.000000e+00> : vector<8x8xf32>
    %34 = tpu.matmul %32, %33, %cst_17 {dimension_numbers = #tpu.dot_dimension_numbers<[1], [0], [0], [1], [0, 0, 1, 1], [], []>} : vector<8x8xbf16>, vector<8x8xbf16>, vector<8x8xf32> -> vector<8x8xf32>
    %35 = arith.truncf %34 : vector<8x8xf32> to vector<8x8xbf16>
    %36 = vector.extract_strided_slice %16 {offsets = [0, 8], sizes = [8, 8], strides = [1, 1]} : vector<8x32xbf16> to vector<8x8xbf16>
    %37 = vector.extract_strided_slice %17 {offsets = [0, 8], sizes = [8, 8], strides = [1, 1]} : vector<8x32xbf16> to vector<8x8xbf16>
    %cst_18 = arith.constant dense<0.000000e+00> : vector<8x8xf32>
    %38 = tpu.matmul %36, %37, %cst_18 {dimension_numbers = #tpu.dot_dimension_numbers<[1], [1], [0], [0], [0, 0, 1, 0], [], []>} : vector<8x8xbf16>, vector<8x8xbf16>, vector<8x8xf32> -> vector<8x8xf32>
    %cst_19 = arith.constant dense<0xFF800000> : vector<8xf32>
    %39 = vector.multi_reduction <maximumf>, %38, %cst_19 [1] : vector<8x8xf32> to vector<8xf32>
    %40 = vector.shape_cast %39 : vector<8xf32> to vector<8x1xf32>
    %41 = vector.broadcast %40 : vector<8x1xf32> to vector<8x8xf32>
    %42 = arith.subf %38, %41 : vector<8x8xf32>
    %43 = math.exp %42 : vector<8x8xf32>
    %cst_20 = arith.constant dense<0.000000e+00> : vector<8xf32>
    %44 = vector.multi_reduction <add>, %43, %cst_20 [1] : vector<8x8xf32> to vector<8xf32>
    %45 = vector.shape_cast %44 : vector<8xf32> to vector<8x1xf32>
    %46 = tpu.reciprocal %45 {approx = true} : vector<8x1xf32> -> vector<8x1xf32>
    %47 = vector.broadcast %46 : vector<8x1xf32> to vector<8x8xf32>
    %48 = arith.mulf %43, %47 : vector<8x8xf32>
    %49 = arith.truncf %48 : vector<8x8xf32> to vector<8x8xbf16>
    %50 = vector.extract_strided_slice %18 {offsets = [0, 8], sizes = [8, 8], strides = [1, 1]} : vector<8x32xbf16> to vector<8x8xbf16>
    %cst_21 = arith.constant dense<0.000000e+00> : vector<8x8xf32>
    %51 = tpu.matmul %49, %50, %cst_21 {dimension_numbers = #tpu.dot_dimension_numbers<[1], [0], [0], [1], [0, 0, 1, 1], [], []>} : vector<8x8xbf16>, vector<8x8xbf16>, vector<8x8xf32> -> vector<8x8xf32>
    %52 = arith.truncf %51 : vector<8x8xf32> to vector<8x8xbf16>
    %53 = vector.extract_strided_slice %16 {offsets = [0, 16], sizes = [8, 8], strides = [1, 1]} : vector<8x32xbf16> to vector<8x8xbf16>
    %54 = vector.extract_strided_slice %17 {offsets = [0, 16], sizes = [8, 8], strides = [1, 1]} : vector<8x32xbf16> to vector<8x8xbf16>
    %cst_22 = arith.constant dense<0.000000e+00> : vector<8x8xf32>
    %55 = tpu.matmul %53, %54, %cst_22 {dimension_numbers = #tpu.dot_dimension_numbers<[1], [1], [0], [0], [0, 0, 1, 0], [], []>} : vector<8x8xbf16>, vector<8x8xbf16>, vector<8x8xf32> -> vector<8x8xf32>
    %cst_23 = arith.constant dense<0xFF800000> : vector<8xf32>
    %56 = vector.multi_reduction <maximumf>, %55, %cst_23 [1] : vector<8x8xf32> to vector<8xf32>
    %57 = vector.shape_cast %56 : vector<8xf32> to vector<8x1xf32>
    %58 = vector.broadcast %57 : vector<8x1xf32> to vector<8x8xf32>
    %59 = arith.subf %55, %58 : vector<8x8xf32>
    %60 = math.exp %59 : vector<8x8xf32>
    %cst_24 = arith.constant dense<0.000000e+00> : vector<8xf32>
    %61 = vector.multi_reduction <add>, %60, %cst_24 [1] : vector<8x8xf32> to vector<8xf32>
    %62 = vector.shape_cast %61 : vector<8xf32> to vector<8x1xf32>
    %63 = tpu.reciprocal %62 {approx = true} : vector<8x1xf32> -> vector<8x1xf32>
    %64 = vector.broadcast %63 : vector<8x1xf32> to vector<8x8xf32>
    %65 = arith.mulf %60, %64 : vector<8x8xf32>
    %66 = arith.truncf %65 : vector<8x8xf32> to vector<8x8xbf16>
    %67 = vector.extract_strided_slice %18 {offsets = [0, 16], sizes = [8, 8], strides = [1, 1]} : vector<8x32xbf16> to vector<8x8xbf16>
    %cst_25 = arith.constant dense<0.000000e+00> : vector<8x8xf32>
    %68 = tpu.matmul %66, %67, %cst_25 {dimension_numbers = #tpu.dot_dimension_numbers<[1], [0], [0], [1], [0, 0, 1, 1], [], []>} : vector<8x8xbf16>, vector<8x8xbf16>, vector<8x8xf32> -> vector<8x8xf32>
    %69 = arith.truncf %68 : vector<8x8xf32> to vector<8x8xbf16>
    %70 = vector.extract_strided_slice %16 {offsets = [0, 24], sizes = [8, 8], strides = [1, 1]} : vector<8x32xbf16> to vector<8x8xbf16>
    %71 = vector.extract_strided_slice %17 {offsets = [0, 24], sizes = [8, 8], strides = [1, 1]} : vector<8x32xbf16> to vector<8x8xbf16>
    %cst_26 = arith.constant dense<0.000000e+00> : vector<8x8xf32>
    %72 = tpu.matmul %70, %71, %cst_26 {dimension_numbers = #tpu.dot_dimension_numbers<[1], [1], [0], [0], [0, 0, 1, 0], [], []>} : vector<8x8xbf16>, vector<8x8xbf16>, vector<8x8xf32> -> vector<8x8xf32>
    %cst_27 = arith.constant dense<0xFF800000> : vector<8xf32>
    %73 = vector.multi_reduction <maximumf>, %72, %cst_27 [1] : vector<8x8xf32> to vector<8xf32>
    %74 = vector.shape_cast %73 : vector<8xf32> to vector<8x1xf32>
    %75 = vector.broadcast %74 : vector<8x1xf32> to vector<8x8xf32>
    %76 = arith.subf %72, %75 : vector<8x8xf32>
    %77 = math.exp %76 : vector<8x8xf32>
    %cst_28 = arith.constant dense<0.000000e+00> : vector<8xf32>
    %78 = vector.multi_reduction <add>, %77, %cst_28 [1] : vector<8x8xf32> to vector<8xf32>
    %79 = vector.shape_cast %78 : vector<8xf32> to vector<8x1xf32>
    %80 = tpu.reciprocal %79 {approx = true} : vector<8x1xf32> -> vector<8x1xf32>
    %81 = vector.broadcast %80 : vector<8x1xf32> to vector<8x8xf32>
    %82 = arith.mulf %77, %81 : vector<8x8xf32>
    %83 = arith.truncf %82 : vector<8x8xf32> to vector<8x8xbf16>
    %84 = vector.extract_strided_slice %18 {offsets = [0, 24], sizes = [8, 8], strides = [1, 1]} : vector<8x32xbf16> to vector<8x8xbf16>
    %cst_29 = arith.constant dense<0.000000e+00> : vector<8x8xf32>
    %85 = tpu.matmul %83, %84, %cst_29 {dimension_numbers = #tpu.dot_dimension_numbers<[1], [0], [0], [1], [0, 0, 1, 1], [], []>} : vector<8x8xbf16>, vector<8x8xbf16>, vector<8x8xf32> -> vector<8x8xf32>
    %86 = arith.truncf %85 : vector<8x8xf32> to vector<8x8xbf16>
    %87 = tpu.concatenate %35, %52, %69, %86 in 1 : vector<8x8xbf16>, vector<8x8xbf16>, vector<8x8xbf16>, vector<8x8xbf16> -> vector<8x32xbf16>
    %c0_30 = arith.constant 0 : index
    %c0_31 = arith.constant 0 : index
    %88 = vector.load %arg8[%c0_30, %c0_31] : memref<32x32xbf16, #tpu.memory_space<vmem>>, vector<32x32xbf16>
    %cst_32 = arith.constant dense<0.000000e+00> : vector<8x32xf32>
    %89 = tpu.matmul %87, %88, %cst_32 {dimension_numbers = #tpu.dot_dimension_numbers<[1], [0], [0], [1], [0, 0, 1, 1], [], []>} : vector<8x32xbf16>, vector<32x32xbf16>, vector<8x32xf32> -> vector<8x32xf32>
    %c0_33 = arith.constant 0 : index
    %c0_34 = arith.constant 0 : index
    %90 = vector.load %arg9[%c0_33, %c0_34] : memref<1x32xf32, #tpu.memory_space<vmem>>, vector<1x32xf32>
    %91 = vector.broadcast %90 : vector<1x32xf32> to vector<8x32xf32>
    %92 = arith.addf %89, %91 : vector<8x32xf32>
    %93 = arith.extf %1 : vector<8x32xbf16> to vector<8x32xf32>
    %94 = arith.addf %93, %92 : vector<8x32xf32>
    %cst_35 = arith.constant dense<0.000000e+00> : vector<8xf32>
    %95 = vector.multi_reduction <add>, %94, %cst_35 [1] : vector<8x32xf32> to vector<8xf32>
    %96 = vector.shape_cast %95 : vector<8xf32> to vector<8x1xf32>
    %cst_36 = arith.constant 3.200000e+01 : f32
    %97 = vector.broadcast %cst_36 : f32 to vector<8x1xf32>
    %98 = arith.divf %96, %97 : vector<8x1xf32>
    %99 = vector.broadcast %98 : vector<8x1xf32> to vector<8x32xf32>
    %100 = arith.subf %94, %99 : vector<8x32xf32>
    %101 = arith.mulf %100, %100 : vector<8x32xf32>
    %cst_37 = arith.constant dense<0.000000e+00> : vector<8xf32>
    %102 = vector.multi_reduction <add>, %101, %cst_37 [1] : vector<8x32xf32> to vector<8xf32>
    %103 = vector.shape_cast %102 : vector<8xf32> to vector<8x1xf32>
    %cst_38 = arith.constant 3.200000e+01 : f32
    %104 = vector.broadcast %cst_38 : f32 to vector<8x1xf32>
    %105 = arith.divf %103, %104 : vector<8x1xf32>
    %106 = vector.broadcast %98 : vector<8x1xf32> to vector<8x32xf32>
    %107 = arith.subf %94, %106 : vector<8x32xf32>
    %cst_39 = arith.constant 9.99999974E-6 : f32
    %108 = vector.broadcast %cst_39 : f32 to vector<8x1xf32>
    %109 = arith.addf %105, %108 : vector<8x1xf32>
    %110 = math.rsqrt %109 : vector<8x1xf32>
    %111 = vector.broadcast %110 : vector<8x1xf32> to vector<8x32xf32>
    %112 = arith.mulf %107, %111 : vector<8x32xf32>
    %c0_40 = arith.constant 0 : index
    %c0_41 = arith.constant 0 : index
    %113 = vector.load %arg10[%c0_40, %c0_41] : memref<1x32xf32, #tpu.memory_space<vmem>>, vector<1x32xf32>
    %114 = vector.broadcast %113 : vector<1x32xf32> to vector<8x32xf32>
    %115 = arith.mulf %112, %114 : vector<8x32xf32>
    %c0_42 = arith.constant 0 : index
    %c0_43 = arith.constant 0 : index
    %116 = vector.load %arg11[%c0_42, %c0_43] : memref<1x32xf32, #tpu.memory_space<vmem>>, vector<1x32xf32>
    %117 = vector.broadcast %116 : vector<1x32xf32> to vector<8x32xf32>
    %118 = arith.addf %115, %117 : vector<8x32xf32>
    %119 = arith.truncf %118 : vector<8x32xf32> to vector<8x32xbf16>
    %c0_44 = arith.constant 0 : index
    %c0_45 = arith.constant 0 : index
    %c0_46 = arith.constant 0 : index
    %120 = vector.load %arg12[%c0_44, %c0_45, %c0_46] : memref<1x8x32xbf16, #tpu.memory_space<vmem>>, vector<1x8x32xbf16>
    %121 = vector.shape_cast %120 : vector<1x8x32xbf16> to vector<8x32xbf16>
    %122 = vector.shape_cast %119 : vector<8x32xbf16> to vector<1x8x32xbf16>
    tpu.vector_store %arg12[%c0_44, %c0_45, %c0_46], %122 {strides = array<i32>} : memref<1x8x32xbf16, #tpu.memory_space<vmem>>, vector<1x8x32xbf16>,
    return
  }
  func.func @transform_0(%arg0: i32, %arg1: i32) -> (i32, i32, i32) {
    %c0_i32 = arith.constant 0 : i32
    %c0_i32_0 = arith.constant 0 : i32
    return %arg0, %arg1, %c0_i32 : i32, i32, i32
  }
  func.func @transform_1(%arg0: i32, %arg1: i32) -> (i32, i32, i32) {
    %c0_i32 = arith.constant 0 : i32
    %c0_i32_0 = arith.constant 0 : i32
    %c0_i32_1 = arith.constant 0 : i32
    return %arg0, %c0_i32, %c0_i32_0 : i32, i32, i32
  }
  func.func @transform_2(%arg0: i32, %arg1: i32) -> (i32, i32) {
    %c0_i32 = arith.constant 0 : i32
    %c0_i32_0 = arith.constant 0 : i32
    %c0_i32_1 = arith.constant 0 : i32
    return %c0_i32, %c0_i32_0 : i32, i32
  }
  func.func @transform_3(%arg0: i32, %arg1: i32) -> (i32, i32) {
    %c0_i32 = arith.constant 0 : i32
    %c0_i32_0 = arith.constant 0 : i32
    %c0_i32_1 = arith.constant 0 : i32
    return %c0_i32, %c0_i32_0 : i32, i32
  }
  func.func @transform_4(%arg0: i32, %arg1: i32) -> (i32, i32) {
    %c0_i32 = arith.constant 0 : i32
    %c0_i32_0 = arith.constant 0 : i32
    %c0_i32_1 = arith.constant 0 : i32
    return %c0_i32, %c0_i32_0 : i32, i32
  }
  func.func @transform_5(%arg0: i32, %arg1: i32) -> (i32, i32) {
    %c0_i32 = arith.constant 0 : i32
    %c0_i32_0 = arith.constant 0 : i32
    %c0_i32_1 = arith.constant 0 : i32
    return %c0_i32, %c0_i32_0 : i32, i32
  }
  func.func @transform_6(%arg0: i32, %arg1: i32) -> (i32, i32) {
    %c0_i32 = arith.constant 0 : i32
    %c0_i32_0 = arith.constant 0 : i32
    %c0_i32_1 = arith.constant 0 : i32
    return %c0_i32, %c0_i32_0 : i32, i32
  }
  func.func @transform_7(%arg0: i32, %arg1: i32) -> (i32, i32) {
    %c0_i32 = arith.constant 0 : i32
    %c0_i32_0 = arith.constant 0 : i32
    %c0_i32_1 = arith.constant 0 : i32
    return %c0_i32, %c0_i32_0 : i32, i32
  }
  func.func @transform_8(%arg0: i32, %arg1: i32) -> (i32, i32) {
    %c0_i32 = arith.constant 0 : i32
    %c0_i32_0 = arith.constant 0 : i32
    %c0_i32_1 = arith.constant 0 : i32
    return %c0_i32, %c0_i32_0 : i32, i32
  }
  func.func @transform_9(%arg0: i32, %arg1: i32) -> (i32, i32) {
    %c0_i32 = arith.constant 0 : i32
    %c0_i32_0 = arith.constant 0 : i32
    %c0_i32_1 = arith.constant 0 : i32
    return %c0_i32, %c0_i32_0 : i32, i32
  }
  func.func @transform_10(%arg0: i32, %arg1: i32) -> (i32, i32, i32) {
    %c0_i32 = arith.constant 0 : i32
    %c0_i32_0 = arith.constant 0 : i32
    return %arg0, %arg1, %c0_i32 : i32, i32, i32
  }
}

module attributes {stable_mosaic.version = 11 : i64} {
  func.func @_ffn_ln_kernel(%arg0: i32, %arg1: memref<16x32xbf16, #tpu.memory_space<vmem>>, %arg2: memref<32x64xbf16, #tpu.memory_space<vmem>>, %arg3: memref<1x64xf32, #tpu.memory_space<vmem>>, %arg4: memref<64x32xbf16, #tpu.memory_space<vmem>>, %arg5: memref<1x32xf32, #tpu.memory_space<vmem>>, %arg6: memref<1x32xf32, #tpu.memory_space<vmem>>, %arg7: memref<1x32xf32, #tpu.memory_space<vmem>>, %arg8: memref<16x32xbf16, #tpu.memory_space<vmem>>) attributes {dimension_semantics = [#tpu.dimension_semantics<parallel>], iteration_bounds = array<i64: 1>, scalar_prefetch = 0 : i64, scratch_operands = 0 : i64, tpu.core_type = #tpu.core_type<tc>, window_params = [{transform_indices = @transform_0, window_bounds = array<i64: 16, 32>}, {pipeline_mode = #tpu.pipeline_mode<synchronous>, transform_indices = @transform_1, window_bounds = array<i64: 32, 64>}, {pipeline_mode = #tpu.pipeline_mode<synchronous>, transform_indices = @transform_2, window_bounds = array<i64: 1, 64>}, {pipeline_mode = #tpu.pipeline_mode<synchronous>, transform_indices = @transform_3, window_bounds = array<i64: 64, 32>}, {pipeline_mode = #tpu.pipeline_mode<synchronous>, transform_indices = @transform_4, window_bounds = array<i64: 1, 32>}, {pipeline_mode = #tpu.pipeline_mode<synchronous>, transform_indices = @transform_5, window_bounds = array<i64: 1, 32>}, {pipeline_mode = #tpu.pipeline_mode<synchronous>, transform_indices = @transform_6, window_bounds = array<i64: 1, 32>}, {transform_indices = @transform_7, window_bounds = array<i64: 16, 32>}]} {
    %c0 = arith.constant 0 : index
    %c0_0 = arith.constant 0 : index
    %0 = vector.load %arg1[%c0, %c0_0] : memref<16x32xbf16, #tpu.memory_space<vmem>>, vector<16x32xbf16>
    %c0_1 = arith.constant 0 : index
    %c0_2 = arith.constant 0 : index
    %1 = vector.load %arg2[%c0_1, %c0_2] : memref<32x64xbf16, #tpu.memory_space<vmem>>, vector<32x64xbf16>
    %cst = arith.constant dense<0.000000e+00> : vector<16x64xf32>
    %2 = tpu.matmul %0, %1, %cst {dimension_numbers = #tpu.dot_dimension_numbers<[1], [0], [0], [1], [0, 0, 1, 1], [], []>} : vector<16x32xbf16>, vector<32x64xbf16>, vector<16x64xf32> -> vector<16x64xf32>
    %c0_3 = arith.constant 0 : index
    %c0_4 = arith.constant 0 : index
    %3 = vector.load %arg3[%c0_3, %c0_4] : memref<1x64xf32, #tpu.memory_space<vmem>>, vector<1x64xf32>
    %4 = vector.broadcast %3 : vector<1x64xf32> to vector<16x64xf32>
    %5 = arith.addf %2, %4 : vector<16x64xf32>
    %cst_5 = arith.constant 0.000000e+00 : f32
    %6 = vector.broadcast %cst_5 : f32 to vector<16x64xf32>
    %7 = arith.maximumf %5, %6 : vector<16x64xf32>
    %8 = arith.truncf %7 : vector<16x64xf32> to vector<16x64xbf16>
    %c0_6 = arith.constant 0 : index
    %c0_7 = arith.constant 0 : index
    %9 = vector.load %arg4[%c0_6, %c0_7] : memref<64x32xbf16, #tpu.memory_space<vmem>>, vector<64x32xbf16>
    %cst_8 = arith.constant dense<0.000000e+00> : vector<16x32xf32>
    %10 = tpu.matmul %8, %9, %cst_8 {dimension_numbers = #tpu.dot_dimension_numbers<[1], [0], [0], [1], [0, 0, 1, 1], [], []>} : vector<16x64xbf16>, vector<64x32xbf16>, vector<16x32xf32> -> vector<16x32xf32>
    %c0_9 = arith.constant 0 : index
    %c0_10 = arith.constant 0 : index
    %11 = vector.load %arg5[%c0_9, %c0_10] : memref<1x32xf32, #tpu.memory_space<vmem>>, vector<1x32xf32>
    %12 = vector.broadcast %11 : vector<1x32xf32> to vector<16x32xf32>
    %13 = arith.addf %10, %12 : vector<16x32xf32>
    %14 = arith.extf %0 : vector<16x32xbf16> to vector<16x32xf32>
    %15 = arith.addf %14, %13 : vector<16x32xf32>
    %cst_11 = arith.constant dense<0.000000e+00> : vector<16xf32>
    %16 = vector.multi_reduction <add>, %15, %cst_11 [1] : vector<16x32xf32> to vector<16xf32>
    %17 = vector.shape_cast %16 : vector<16xf32> to vector<16x1xf32>
    %cst_12 = arith.constant 3.200000e+01 : f32
    %18 = vector.broadcast %cst_12 : f32 to vector<16x1xf32>
    %19 = arith.divf %17, %18 : vector<16x1xf32>
    %20 = vector.broadcast %19 : vector<16x1xf32> to vector<16x32xf32>
    %21 = arith.subf %15, %20 : vector<16x32xf32>
    %22 = arith.mulf %21, %21 : vector<16x32xf32>
    %cst_13 = arith.constant dense<0.000000e+00> : vector<16xf32>
    %23 = vector.multi_reduction <add>, %22, %cst_13 [1] : vector<16x32xf32> to vector<16xf32>
    %24 = vector.shape_cast %23 : vector<16xf32> to vector<16x1xf32>
    %cst_14 = arith.constant 3.200000e+01 : f32
    %25 = vector.broadcast %cst_14 : f32 to vector<16x1xf32>
    %26 = arith.divf %24, %25 : vector<16x1xf32>
    %27 = vector.broadcast %19 : vector<16x1xf32> to vector<16x32xf32>
    %28 = arith.subf %15, %27 : vector<16x32xf32>
    %cst_15 = arith.constant 9.99999974E-6 : f32
    %29 = vector.broadcast %cst_15 : f32 to vector<16x1xf32>
    %30 = arith.addf %26, %29 : vector<16x1xf32>
    %31 = math.rsqrt %30 : vector<16x1xf32>
    %32 = vector.broadcast %31 : vector<16x1xf32> to vector<16x32xf32>
    %33 = arith.mulf %28, %32 : vector<16x32xf32>
    %c0_16 = arith.constant 0 : index
    %c0_17 = arith.constant 0 : index
    %34 = vector.load %arg6[%c0_16, %c0_17] : memref<1x32xf32, #tpu.memory_space<vmem>>, vector<1x32xf32>
    %35 = vector.broadcast %34 : vector<1x32xf32> to vector<16x32xf32>
    %36 = arith.mulf %33, %35 : vector<16x32xf32>
    %c0_18 = arith.constant 0 : index
    %c0_19 = arith.constant 0 : index
    %37 = vector.load %arg7[%c0_18, %c0_19] : memref<1x32xf32, #tpu.memory_space<vmem>>, vector<1x32xf32>
    %38 = vector.broadcast %37 : vector<1x32xf32> to vector<16x32xf32>
    %39 = arith.addf %36, %38 : vector<16x32xf32>
    %40 = arith.truncf %39 : vector<16x32xf32> to vector<16x32xbf16>
    %c0_20 = arith.constant 0 : index
    %c0_21 = arith.constant 0 : index
    %41 = vector.load %arg8[%c0_20, %c0_21] : memref<16x32xbf16, #tpu.memory_space<vmem>>, vector<16x32xbf16>
    tpu.vector_store %arg8[%c0_20, %c0_21], %40 {strides = array<i32>} : memref<16x32xbf16, #tpu.memory_space<vmem>>, vector<16x32xbf16>,
    return
  }
  func.func @transform_0(%arg0: i32) -> (i32, i32) {
    %c0_i32 = arith.constant 0 : i32
    %c0_i32_0 = arith.constant 0 : i32
    return %arg0, %c0_i32 : i32, i32
  }
  func.func @transform_1(%arg0: i32) -> (i32, i32) {
    %c0_i32 = arith.constant 0 : i32
    %c0_i32_0 = arith.constant 0 : i32
    %c0_i32_1 = arith.constant 0 : i32
    return %c0_i32, %c0_i32_0 : i32, i32
  }
  func.func @transform_2(%arg0: i32) -> (i32, i32) {
    %c0_i32 = arith.constant 0 : i32
    %c0_i32_0 = arith.constant 0 : i32
    %c0_i32_1 = arith.constant 0 : i32
    return %c0_i32, %c0_i32_0 : i32, i32
  }
  func.func @transform_3(%arg0: i32) -> (i32, i32) {
    %c0_i32 = arith.constant 0 : i32
    %c0_i32_0 = arith.constant 0 : i32
    %c0_i32_1 = arith.constant 0 : i32
    return %c0_i32, %c0_i32_0 : i32, i32
  }
  func.func @transform_4(%arg0: i32) -> (i32, i32) {
    %c0_i32 = arith.constant 0 : i32
    %c0_i32_0 = arith.constant 0 : i32
    %c0_i32_1 = arith.constant 0 : i32
    return %c0_i32, %c0_i32_0 : i32, i32
  }
  func.func @transform_5(%arg0: i32) -> (i32, i32) {
    %c0_i32 = arith.constant 0 : i32
    %c0_i32_0 = arith.constant 0 : i32
    %c0_i32_1 = arith.constant 0 : i32
    return %c0_i32, %c0_i32_0 : i32, i32
  }
  func.func @transform_6(%arg0: i32) -> (i32, i32) {
    %c0_i32 = arith.constant 0 : i32
    %c0_i32_0 = arith.constant 0 : i32
    %c0_i32_1 = arith.constant 0 : i32
    return %c0_i32, %c0_i32_0 : i32, i32
  }
  func.func @transform_7(%arg0: i32) -> (i32, i32) {
    %c0_i32 = arith.constant 0 : i32
    %c0_i32_0 = arith.constant 0 : i32
    return %arg0, %c0_i32 : i32, i32
  }
}

module attributes {stable_mosaic.version = 11 : i64} {
  func.func @_attn_ln_kernel(%arg0: i32, %arg1: i32, %arg2: memref<1x8x32xbf16, #tpu.memory_space<vmem>>, %arg3: memref<1x8x32xbf16, #tpu.memory_space<vmem>>, %arg4: memref<32x32xbf16, #tpu.memory_space<vmem>>, %arg5: memref<1x32xf32, #tpu.memory_space<vmem>>, %arg6: memref<32x64xbf16, #tpu.memory_space<vmem>>, %arg7: memref<1x32xf32, #tpu.memory_space<vmem>>, %arg8: memref<32x32xbf16, #tpu.memory_space<vmem>>, %arg9: memref<1x32xf32, #tpu.memory_space<vmem>>, %arg10: memref<1x32xf32, #tpu.memory_space<vmem>>, %arg11: memref<1x32xf32, #tpu.memory_space<vmem>>, %arg12: memref<1x8x32xbf16, #tpu.memory_space<vmem>>) attributes {dimension_semantics = [#tpu.dimension_semantics<parallel>, #tpu.dimension_semantics<parallel>], iteration_bounds = array<i64: 2, 1>, scalar_prefetch = 0 : i64, scratch_operands = 0 : i64, tpu.core_type = #tpu.core_type<tc>, window_params = [{transform_indices = @transform_0, window_bounds = array<i64: 1, 8, 32>}, {transform_indices = @transform_1, window_bounds = array<i64: 1, 8, 32>}, {pipeline_mode = #tpu.pipeline_mode<synchronous>, transform_indices = @transform_2, window_bounds = array<i64: 32, 32>}, {pipeline_mode = #tpu.pipeline_mode<synchronous>, transform_indices = @transform_3, window_bounds = array<i64: 1, 32>}, {pipeline_mode = #tpu.pipeline_mode<synchronous>, transform_indices = @transform_4, window_bounds = array<i64: 32, 64>}, {pipeline_mode = #tpu.pipeline_mode<synchronous>, transform_indices = @transform_5, window_bounds = array<i64: 1, 32>}, {pipeline_mode = #tpu.pipeline_mode<synchronous>, transform_indices = @transform_6, window_bounds = array<i64: 32, 32>}, {pipeline_mode = #tpu.pipeline_mode<synchronous>, transform_indices = @transform_7, window_bounds = array<i64: 1, 32>}, {pipeline_mode = #tpu.pipeline_mode<synchronous>, transform_indices = @transform_8, window_bounds = array<i64: 1, 32>}, {pipeline_mode = #tpu.pipeline_mode<synchronous>, transform_indices = @transform_9, window_bounds = array<i64: 1, 32>}, {transform_indices = @transform_10, window_bounds = array<i64: 1, 8, 32>}]} {
    %c0 = arith.constant 0 : index
    %c0_0 = arith.constant 0 : index
    %c0_1 = arith.constant 0 : index
    %0 = vector.load %arg2[%c0, %c0_0, %c0_1] : memref<1x8x32xbf16, #tpu.memory_space<vmem>>, vector<1x8x32xbf16>
    %1 = vector.shape_cast %0 : vector<1x8x32xbf16> to vector<8x32xbf16>
    %c0_2 = arith.constant 0 : index
    %c0_3 = arith.constant 0 : index
    %c0_4 = arith.constant 0 : index
    %2 = vector.load %arg3[%c0_2, %c0_3, %c0_4] : memref<1x8x32xbf16, #tpu.memory_space<vmem>>, vector<1x8x32xbf16>
    %3 = vector.shape_cast %2 : vector<1x8x32xbf16> to vector<8x32xbf16>
    %c0_5 = arith.constant 0 : index
    %c0_6 = arith.constant 0 : index
    %4 = vector.load %arg4[%c0_5, %c0_6] : memref<32x32xbf16, #tpu.memory_space<vmem>>, vector<32x32xbf16>
    %cst = arith.constant dense<0.000000e+00> : vector<8x32xf32>
    %5 = tpu.matmul %1, %4, %cst {dimension_numbers = #tpu.dot_dimension_numbers<[1], [0], [0], [1], [0, 0, 1, 1], [], []>} : vector<8x32xbf16>, vector<32x32xbf16>, vector<8x32xf32> -> vector<8x32xf32>
    %c0_7 = arith.constant 0 : index
    %c0_8 = arith.constant 0 : index
    %6 = vector.load %arg5[%c0_7, %c0_8] : memref<1x32xf32, #tpu.memory_space<vmem>>, vector<1x32xf32>
    %7 = vector.broadcast %6 : vector<1x32xf32> to vector<8x32xf32>
    %8 = arith.addf %5, %7 : vector<8x32xf32>
    %c0_9 = arith.constant 0 : index
    %c0_10 = arith.constant 0 : index
    %9 = vector.load %arg6[%c0_9, %c0_10] : memref<32x64xbf16, #tpu.memory_space<vmem>>, vector<32x64xbf16>
    %cst_11 = arith.constant dense<0.000000e+00> : vector<8x64xf32>
    %10 = tpu.matmul %3, %9, %cst_11 {dimension_numbers = #tpu.dot_dimension_numbers<[1], [0], [0], [1], [0, 0, 1, 1], [], []>} : vector<8x32xbf16>, vector<32x64xbf16>, vector<8x64xf32> -> vector<8x64xf32>
    %11 = vector.extract_strided_slice %10 {offsets = [0, 0], sizes = [8, 32], strides = [1, 1]} : vector<8x64xf32> to vector<8x32xf32>
    %12 = vector.extract_strided_slice %10 {offsets = [0, 32], sizes = [8, 32], strides = [1, 1]} : vector<8x64xf32> to vector<8x32xf32>
    %c0_12 = arith.constant 0 : index
    %c0_13 = arith.constant 0 : index
    %13 = vector.load %arg7[%c0_12, %c0_13] : memref<1x32xf32, #tpu.memory_space<vmem>>, vector<1x32xf32>
    %14 = vector.broadcast %13 : vector<1x32xf32> to vector<8x32xf32>
    %15 = arith.addf %12, %14 : vector<8x32xf32>
    %16 = arith.truncf %8 : vector<8x32xf32> to vector<8x32xbf16>
    %17 = arith.truncf %11 : vector<8x32xf32> to vector<8x32xbf16>
    %18 = arith.truncf %15 : vector<8x32xf32> to vector<8x32xbf16>
    %19 = vector.extract_strided_slice %16 {offsets = [0, 0], sizes = [8, 8], strides = [1, 1]} : vector<8x32xbf16> to vector<8x8xbf16>
    %20 = vector.extract_strided_slice %17 {offsets = [0, 0], sizes = [8, 8], strides = [1, 1]} : vector<8x32xbf16> to vector<8x8xbf16>
    %cst_14 = arith.constant dense<0.000000e+00> : vector<8x8xf32>
    %21 = tpu.matmul %19, %20, %cst_14 {dimension_numbers = #tpu.dot_dimension_numbers<[1], [1], [0], [0], [0, 0, 1, 0], [], []>} : vector<8x8xbf16>, vector<8x8xbf16>, vector<8x8xf32> -> vector<8x8xf32>
    %cst_15 = arith.constant dense<0xFF800000> : vector<8xf32>
    %22 = vector.multi_reduction <maximumf>, %21, %cst_15 [1] : vector<8x8xf32> to vector<8xf32>
    %23 = vector.shape_cast %22 : vector<8xf32> to vector<8x1xf32>
    %24 = vector.broadcast %23 : vector<8x1xf32> to vector<8x8xf32>
    %25 = arith.subf %21, %24 : vector<8x8xf32>
    %26 = math.exp %25 : vector<8x8xf32>
    %cst_16 = arith.constant dense<0.000000e+00> : vector<8xf32>
    %27 = vector.multi_reduction <add>, %26, %cst_16 [1] : vector<8x8xf32> to vector<8xf32>
    %28 = vector.shape_cast %27 : vector<8xf32> to vector<8x1xf32>
    %29 = tpu.reciprocal %28 {approx = true} : vector<8x1xf32> -> vector<8x1xf32>
    %30 = vector.broadcast %29 : vector<8x1xf32> to vector<8x8xf32>
    %31 = arith.mulf %26, %30 : vector<8x8xf32>
    %32 = arith.truncf %31 : vector<8x8xf32> to vector<8x8xbf16>
    %33 = vector.extract_strided_slice %18 {offsets = [0, 0], sizes = [8, 8], strides = [1, 1]} : vector<8x32xbf16> to vector<8x8xbf16>
    %cst_17 = arith.constant dense<0.000000e+00> : vector<8x8xf32>
    %34 = tpu.matmul %32, %33, %cst_17 {dimension_numbers = #tpu.dot_dimension_numbers<[1], [0], [0], [1], [0, 0, 1, 1], [], []>} : vector<8x8xbf16>, vector<8x8xbf16>, vector<8x8xf32> -> vector<8x8xf32>
    %35 = arith.truncf %34 : vector<8x8xf32> to vector<8x8xbf16>
    %36 = vector.extract_strided_slice %16 {offsets = [0, 8], sizes = [8, 8], strides = [1, 1]} : vector<8x32xbf16> to vector<8x8xbf16>
    %37 = vector.extract_strided_slice %17 {offsets = [0, 8], sizes = [8, 8], strides = [1, 1]} : vector<8x32xbf16> to vector<8x8xbf16>
    %cst_18 = arith.constant dense<0.000000e+00> : vector<8x8xf32>
    %38 = tpu.matmul %36, %37, %cst_18 {dimension_numbers = #tpu.dot_dimension_numbers<[1], [1], [0], [0], [0, 0, 1, 0], [], []>} : vector<8x8xbf16>, vector<8x8xbf16>, vector<8x8xf32> -> vector<8x8xf32>
    %cst_19 = arith.constant dense<0xFF800000> : vector<8xf32>
    %39 = vector.multi_reduction <maximumf>, %38, %cst_19 [1] : vector<8x8xf32> to vector<8xf32>
    %40 = vector.shape_cast %39 : vector<8xf32> to vector<8x1xf32>
    %41 = vector.broadcast %40 : vector<8x1xf32> to vector<8x8xf32>
    %42 = arith.subf %38, %41 : vector<8x8xf32>
    %43 = math.exp %42 : vector<8x8xf32>
    %cst_20 = arith.constant dense<0.000000e+00> : vector<8xf32>
    %44 = vector.multi_reduction <add>, %43, %cst_20 [1] : vector<8x8xf32> to vector<8xf32>
    %45 = vector.shape_cast %44 : vector<8xf32> to vector<8x1xf32>
    %46 = tpu.reciprocal %45 {approx = true} : vector<8x1xf32> -> vector<8x1xf32>
    %47 = vector.broadcast %46 : vector<8x1xf32> to vector<8x8xf32>
    %48 = arith.mulf %43, %47 : vector<8x8xf32>
    %49 = arith.truncf %48 : vector<8x8xf32> to vector<8x8xbf16>
    %50 = vector.extract_strided_slice %18 {offsets = [0, 8], sizes = [8, 8], strides = [1, 1]} : vector<8x32xbf16> to vector<8x8xbf16>
    %cst_21 = arith.constant dense<0.000000e+00> : vector<8x8xf32>
    %51 = tpu.matmul %49, %50, %cst_21 {dimension_numbers = #tpu.dot_dimension_numbers<[1], [0], [0], [1], [0, 0, 1, 1], [], []>} : vector<8x8xbf16>, vector<8x8xbf16>, vector<8x8xf32> -> vector<8x8xf32>
    %52 = arith.truncf %51 : vector<8x8xf32> to vector<8x8xbf16>
    %53 = vector.extract_strided_slice %16 {offsets = [0, 16], sizes = [8, 8], strides = [1, 1]} : vector<8x32xbf16> to vector<8x8xbf16>
    %54 = vector.extract_strided_slice %17 {offsets = [0, 16], sizes = [8, 8], strides = [1, 1]} : vector<8x32xbf16> to vector<8x8xbf16>
    %cst_22 = arith.constant dense<0.000000e+00> : vector<8x8xf32>
    %55 = tpu.matmul %53, %54, %cst_22 {dimension_numbers = #tpu.dot_dimension_numbers<[1], [1], [0], [0], [0, 0, 1, 0], [], []>} : vector<8x8xbf16>, vector<8x8xbf16>, vector<8x8xf32> -> vector<8x8xf32>
    %cst_23 = arith.constant dense<0xFF800000> : vector<8xf32>
    %56 = vector.multi_reduction <maximumf>, %55, %cst_23 [1] : vector<8x8xf32> to vector<8xf32>
    %57 = vector.shape_cast %56 : vector<8xf32> to vector<8x1xf32>
    %58 = vector.broadcast %57 : vector<8x1xf32> to vector<8x8xf32>
    %59 = arith.subf %55, %58 : vector<8x8xf32>
    %60 = math.exp %59 : vector<8x8xf32>
    %cst_24 = arith.constant dense<0.000000e+00> : vector<8xf32>
    %61 = vector.multi_reduction <add>, %60, %cst_24 [1] : vector<8x8xf32> to vector<8xf32>
    %62 = vector.shape_cast %61 : vector<8xf32> to vector<8x1xf32>
    %63 = tpu.reciprocal %62 {approx = true} : vector<8x1xf32> -> vector<8x1xf32>
    %64 = vector.broadcast %63 : vector<8x1xf32> to vector<8x8xf32>
    %65 = arith.mulf %60, %64 : vector<8x8xf32>
    %66 = arith.truncf %65 : vector<8x8xf32> to vector<8x8xbf16>
    %67 = vector.extract_strided_slice %18 {offsets = [0, 16], sizes = [8, 8], strides = [1, 1]} : vector<8x32xbf16> to vector<8x8xbf16>
    %cst_25 = arith.constant dense<0.000000e+00> : vector<8x8xf32>
    %68 = tpu.matmul %66, %67, %cst_25 {dimension_numbers = #tpu.dot_dimension_numbers<[1], [0], [0], [1], [0, 0, 1, 1], [], []>} : vector<8x8xbf16>, vector<8x8xbf16>, vector<8x8xf32> -> vector<8x8xf32>
    %69 = arith.truncf %68 : vector<8x8xf32> to vector<8x8xbf16>
    %70 = vector.extract_strided_slice %16 {offsets = [0, 24], sizes = [8, 8], strides = [1, 1]} : vector<8x32xbf16> to vector<8x8xbf16>
    %71 = vector.extract_strided_slice %17 {offsets = [0, 24], sizes = [8, 8], strides = [1, 1]} : vector<8x32xbf16> to vector<8x8xbf16>
    %cst_26 = arith.constant dense<0.000000e+00> : vector<8x8xf32>
    %72 = tpu.matmul %70, %71, %cst_26 {dimension_numbers = #tpu.dot_dimension_numbers<[1], [1], [0], [0], [0, 0, 1, 0], [], []>} : vector<8x8xbf16>, vector<8x8xbf16>, vector<8x8xf32> -> vector<8x8xf32>
    %cst_27 = arith.constant dense<0xFF800000> : vector<8xf32>
    %73 = vector.multi_reduction <maximumf>, %72, %cst_27 [1] : vector<8x8xf32> to vector<8xf32>
    %74 = vector.shape_cast %73 : vector<8xf32> to vector<8x1xf32>
    %75 = vector.broadcast %74 : vector<8x1xf32> to vector<8x8xf32>
    %76 = arith.subf %72, %75 : vector<8x8xf32>
    %77 = math.exp %76 : vector<8x8xf32>
    %cst_28 = arith.constant dense<0.000000e+00> : vector<8xf32>
    %78 = vector.multi_reduction <add>, %77, %cst_28 [1] : vector<8x8xf32> to vector<8xf32>
    %79 = vector.shape_cast %78 : vector<8xf32> to vector<8x1xf32>
    %80 = tpu.reciprocal %79 {approx = true} : vector<8x1xf32> -> vector<8x1xf32>
    %81 = vector.broadcast %80 : vector<8x1xf32> to vector<8x8xf32>
    %82 = arith.mulf %77, %81 : vector<8x8xf32>
    %83 = arith.truncf %82 : vector<8x8xf32> to vector<8x8xbf16>
    %84 = vector.extract_strided_slice %18 {offsets = [0, 24], sizes = [8, 8], strides = [1, 1]} : vector<8x32xbf16> to vector<8x8xbf16>
    %cst_29 = arith.constant dense<0.000000e+00> : vector<8x8xf32>
    %85 = tpu.matmul %83, %84, %cst_29 {dimension_numbers = #tpu.dot_dimension_numbers<[1], [0], [0], [1], [0, 0, 1, 1], [], []>} : vector<8x8xbf16>, vector<8x8xbf16>, vector<8x8xf32> -> vector<8x8xf32>
    %86 = arith.truncf %85 : vector<8x8xf32> to vector<8x8xbf16>
    %87 = tpu.concatenate %35, %52, %69, %86 in 1 : vector<8x8xbf16>, vector<8x8xbf16>, vector<8x8xbf16>, vector<8x8xbf16> -> vector<8x32xbf16>
    %c0_30 = arith.constant 0 : index
    %c0_31 = arith.constant 0 : index
    %88 = vector.load %arg8[%c0_30, %c0_31] : memref<32x32xbf16, #tpu.memory_space<vmem>>, vector<32x32xbf16>
    %cst_32 = arith.constant dense<0.000000e+00> : vector<8x32xf32>
    %89 = tpu.matmul %87, %88, %cst_32 {dimension_numbers = #tpu.dot_dimension_numbers<[1], [0], [0], [1], [0, 0, 1, 1], [], []>} : vector<8x32xbf16>, vector<32x32xbf16>, vector<8x32xf32> -> vector<8x32xf32>
    %c0_33 = arith.constant 0 : index
    %c0_34 = arith.constant 0 : index
    %90 = vector.load %arg9[%c0_33, %c0_34] : memref<1x32xf32, #tpu.memory_space<vmem>>, vector<1x32xf32>
    %91 = vector.broadcast %90 : vector<1x32xf32> to vector<8x32xf32>
    %92 = arith.addf %89, %91 : vector<8x32xf32>
    %93 = arith.extf %1 : vector<8x32xbf16> to vector<8x32xf32>
    %94 = arith.addf %93, %92 : vector<8x32xf32>
    %cst_35 = arith.constant dense<0.000000e+00> : vector<8xf32>
    %95 = vector.multi_reduction <add>, %94, %cst_35 [1] : vector<8x32xf32> to vector<8xf32>
    %96 = vector.shape_cast %95 : vector<8xf32> to vector<8x1xf32>
    %cst_36 = arith.constant 3.200000e+01 : f32
    %97 = vector.broadcast %cst_36 : f32 to vector<8x1xf32>
    %98 = arith.divf %96, %97 : vector<8x1xf32>
    %99 = vector.broadcast %98 : vector<8x1xf32> to vector<8x32xf32>
    %100 = arith.subf %94, %99 : vector<8x32xf32>
    %101 = arith.mulf %100, %100 : vector<8x32xf32>
    %cst_37 = arith.constant dense<0.000000e+00> : vector<8xf32>
    %102 = vector.multi_reduction <add>, %101, %cst_37 [1] : vector<8x32xf32> to vector<8xf32>
    %103 = vector.shape_cast %102 : vector<8xf32> to vector<8x1xf32>
    %cst_38 = arith.constant 3.200000e+01 : f32
    %104 = vector.broadcast %cst_38 : f32 to vector<8x1xf32>
    %105 = arith.divf %103, %104 : vector<8x1xf32>
    %106 = vector.broadcast %98 : vector<8x1xf32> to vector<8x32xf32>
    %107 = arith.subf %94, %106 : vector<8x32xf32>
    %cst_39 = arith.constant 9.99999974E-6 : f32
    %108 = vector.broadcast %cst_39 : f32 to vector<8x1xf32>
    %109 = arith.addf %105, %108 : vector<8x1xf32>
    %110 = math.rsqrt %109 : vector<8x1xf32>
    %111 = vector.broadcast %110 : vector<8x1xf32> to vector<8x32xf32>
    %112 = arith.mulf %107, %111 : vector<8x32xf32>
    %c0_40 = arith.constant 0 : index
    %c0_41 = arith.constant 0 : index
    %113 = vector.load %arg10[%c0_40, %c0_41] : memref<1x32xf32, #tpu.memory_space<vmem>>, vector<1x32xf32>
    %114 = vector.broadcast %113 : vector<1x32xf32> to vector<8x32xf32>
    %115 = arith.mulf %112, %114 : vector<8x32xf32>
    %c0_42 = arith.constant 0 : index
    %c0_43 = arith.constant 0 : index
    %116 = vector.load %arg11[%c0_42, %c0_43] : memref<1x32xf32, #tpu.memory_space<vmem>>, vector<1x32xf32>
    %117 = vector.broadcast %116 : vector<1x32xf32> to vector<8x32xf32>
    %118 = arith.addf %115, %117 : vector<8x32xf32>
    %119 = arith.truncf %118 : vector<8x32xf32> to vector<8x32xbf16>
    %c0_44 = arith.constant 0 : index
    %c0_45 = arith.constant 0 : index
    %c0_46 = arith.constant 0 : index
    %120 = vector.load %arg12[%c0_44, %c0_45, %c0_46] : memref<1x8x32xbf16, #tpu.memory_space<vmem>>, vector<1x8x32xbf16>
    %121 = vector.shape_cast %120 : vector<1x8x32xbf16> to vector<8x32xbf16>
    %122 = vector.shape_cast %119 : vector<8x32xbf16> to vector<1x8x32xbf16>
    tpu.vector_store %arg12[%c0_44, %c0_45, %c0_46], %122 {strides = array<i32>} : memref<1x8x32xbf16, #tpu.memory_space<vmem>>, vector<1x8x32xbf16>,
    return
  }
  func.func @transform_0(%arg0: i32, %arg1: i32) -> (i32, i32, i32) {
    %c0_i32 = arith.constant 0 : i32
    %c0_i32_0 = arith.constant 0 : i32
    return %arg0, %arg1, %c0_i32 : i32, i32, i32
  }
  func.func @transform_1(%arg0: i32, %arg1: i32) -> (i32, i32, i32) {
    %c0_i32 = arith.constant 0 : i32
    %c0_i32_0 = arith.constant 0 : i32
    %c0_i32_1 = arith.constant 0 : i32
    return %arg0, %c0_i32, %c0_i32_0 : i32, i32, i32
  }
  func.func @transform_2(%arg0: i32, %arg1: i32) -> (i32, i32) {
    %c0_i32 = arith.constant 0 : i32
    %c0_i32_0 = arith.constant 0 : i32
    %c0_i32_1 = arith.constant 0 : i32
    return %c0_i32, %c0_i32_0 : i32, i32
  }
  func.func @transform_3(%arg0: i32, %arg1: i32) -> (i32, i32) {
    %c0_i32 = arith.constant 0 : i32
    %c0_i32_0 = arith.constant 0 : i32
    %c0_i32_1 = arith.constant 0 : i32
    return %c0_i32, %c0_i32_0 : i32, i32
  }
  func.func @transform_4(%arg0: i32, %arg1: i32) -> (i32, i32) {
    %c0_i32 = arith.constant 0 : i32
    %c0_i32_0 = arith.constant 0 : i32
    %c0_i32_1 = arith.constant 0 : i32
    return %c0_i32, %c0_i32_0 : i32, i32
  }
  func.func @transform_5(%arg0: i32, %arg1: i32) -> (i32, i32) {
    %c0_i32 = arith.constant 0 : i32
    %c0_i32_0 = arith.constant 0 : i32
    %c0_i32_1 = arith.constant 0 : i32
    return %c0_i32, %c0_i32_0 : i32, i32
  }
  func.func @transform_6(%arg0: i32, %arg1: i32) -> (i32, i32) {
    %c0_i32 = arith.constant 0 : i32
    %c0_i32_0 = arith.constant 0 : i32
    %c0_i32_1 = arith.constant 0 : i32
    return %c0_i32, %c0_i32_0 : i32, i32
  }
  func.func @transform_7(%arg0: i32, %arg1: i32) -> (i32, i32) {
    %c0_i32 = arith.constant 0 : i32
    %c0_i32_0 = arith.constant 0 : i32
    %c0_i32_1 = arith.constant 0 : i32
    return %c0_i32, %c0_i32_0 : i32, i32
  }
  func.func @transform_8(%arg0: i32, %arg1: i32) -> (i32, i32) {
    %c0_i32 = arith.constant 0 : i32
    %c0_i32_0 = arith.constant 0 : i32
    %c0_i32_1 = arith.constant 0 : i32
    return %c0_i32, %c0_i32_0 : i32, i32
  }
  func.func @transform_9(%arg0: i32, %arg1: i32) -> (i32, i32) {
    %c0_i32 = arith.constant 0 : i32
    %c0_i32_0 = arith.constant 0 : i32
    %c0_i32_1 = arith.constant 0 : i32
    return %c0_i32, %c0_i32_0 : i32, i32
  }
  func.func @transform_10(%arg0: i32, %arg1: i32) -> (i32, i32, i32) {
    %c0_i32 = arith.constant 0 : i32
    %c0_i32_0 = arith.constant 0 : i32
    return %arg0, %arg1, %c0_i32 : i32, i32, i32
  }
}

</mosaic_0001>

<bundles_post_ra>
// kernel: transformer_encoder.4
= control target key start
LH: loop header
LB: loop body
LE: loop exit
PB: predicated region body
PF: predicated region fallthrough
CT: control target
= control target key end

     0   :  { %s1775_s0 = inlined_call_operand.vmem [shape: bf16[2,8,32], index: 0, kind: input, shape index: {}, may-alias: {0,1}]   ;;  %s1776_s1 = inlined_call_operand.vmem [shape: bf16[2,8,32], index: 1, kind: input, shape index: {}, may-alias: {0,1}]   ;;  %s1777_s2 = inlined_call_operand.vmem [shape: bf16[32,32], index: 2, kind: input, shape index: {}]   ;;  %s1778_s3 = inlined_call_operand.hbm [shape: f32[1,32], index: 3, kind: input, shape index: {}]   ;;  %s1779_s4 = inlined_call_operand.hbm [shape: bf16[32,64], index: 4, kind: input, shape index: {}]   ;;  %s1780_s5 = inlined_call_operand.hbm [shape: f32[1,32], index: 5, kind: input, shape index: {}]   ;;  %s1781_s6 = inlined_call_operand.hbm [shape: bf16[32,32], index: 6, kind: input, shape index: {}]   ;;  %s1782_s7 = inlined_call_operand.hbm [shape: f32[1,32], index: 7, kind: input, shape index: {}]   ;;  %s1783_s8 = inlined_call_operand.hbm [shape: f32[1,32], index: 8, kind: input, shape index: {}]   ;;  %s1784_s9 = inlined_call_operand.hbm [shape: f32[1,32], index: 9, kind: input, shape index: {}]   ;;  %s1785_s10 = inlined_call_operand.vmem [shape: bf16[2,8,32], index: 10, kind: output, shape index: {}]  }
   0x1   :  { %1786 = sst [smem:[#allocation17_spill]] %s1779_s4 }
   0x2   :  { %15 = vsyncpa [#allocation3], 0 }
   0x3   :  { %16 = vsyncpa [#allocation5], 0 }
   0x4   :  { %17 = vsyncpa [#allocation8], 0 }
   0x5   :  { %18 = vsyncpa [#allocation11], 0  ;;  %s1610_s13 = smov 0   ;;  %s1612_s14 = smov 0  }
   0x6   :  { %s1614_s15 = smov 0  }
   0x7 LB: > { %s1787_s4 = sld [smem:[#allocation17_spill]]  ;;  %s1085_s19 = sadd.s32 4294967295, %s1532_s15   ;;  %s1532_s15 = sphi %s1614_s15, %s24_s15   ;;  %s1528_s14 = sphi %s1612_s14, %s1792_s14   ;;  %s1524_s13 = sphi %s1610_s13, %s1791_s13  }
   0x8   : > { %p1087_p0 = scmp.ge.s32.totalorder %s1532_s15, 1  ;;  %p291_p1 = scmp.lt.s32.totalorder %s1532_s15, 3 }
   0x9   : > { %p1631_p2 = scmp.eq.s32.totalorder %s1085_s19, 0  ;;  %s1534_s22 = smov [#allocation4]  }
   0xa   : > { %p1635_p3 = pnand %p1087_p0, %p291_p1  ;;  %s319_s23 = sshll.u32 %s1534_s22, 4  ;;  %s320_s23 = int_to_ptr.vmem [resolvable:$true] %s319_s23 }
   0xb   : > { %s343_s26 = sshll.u32 %s1781_s6, 4  ;;  %s1535_s28 = smov [#allocation7]   ;;  %s344_s26 = int_to_ptr.hbm [resolvable:$true] %s343_s26 }
   0xc   : > { %p1178_p4 = pneg %p1635_p3  ;;  %s345_s29 = sshll.u32 %s1535_s28, 4  ;;  %s346_s29 = int_to_ptr.vmem [resolvable:$true] %s345_s29 }
   0xd   : > { %s317_s18 = sshll.u32 %s1787_s4, 4  ;;  %s370_s12 = sshll.u32 %s1783_s8, 4  ;;  %s318_s18 = int_to_ptr.hbm [resolvable:$true] %s317_s18  ;;  %s371_s12 = int_to_ptr.hbm [resolvable:$true] %s370_s12 }
   0xe   : > { %p1646_p5 = pnand %p1631_p2, %p1178_p4  ;;  %s1536_s16 = smov 64  }
   0xf   : > { %s1537_s17 = smov 4   ;;  %s1538_s19 = smov [#allocation10]  }
  0x10   : > { %1184 = dma.hbm_to_vmem [thread:$0]  (!%p1646_p5), %s318_s18, 256, %s320_s23, [#allocation5], %s1536_s16, %s1536_s16, %s1537_s17  }
  0x11   : > { %1190 = dma.hbm_to_vmem [thread:$0]  (!%p1646_p5), %s344_s26, 256, %s346_s29, [#allocation8], %s1536_s16, %s1536_s16, %s1537_s17  }
  0x12   : > { %s372_s22 = sshll.u32 %s1538_s19, 4  ;;  %s36_s24 = sadd.s32 1, %s1528_s14  ;;  %s373_s22 = int_to_ptr.vmem [resolvable:$true] %s372_s22 }
  0x13   : > { %1196 = dma.hbm_to_vmem [thread:$0]  (!%p1646_p5), %s371_s12, 16, %s373_s22, [#allocation11]  }
  0x14   : > { %s306_s30 = sshll.u32 %s1778_s3, 4  ;;  %p38_p6 = scmp.ge.s32.totalorder %s36_s24, 2  ;;  %s307_s30 = int_to_ptr.hbm [resolvable:$true] %s306_s30 }
  0x15   : > { %s332_s18 = sshll.u32 %s1780_s5, 4  ;;  %s1539_s23 = smov [#allocation2]   ;;  %s333_s18 = int_to_ptr.hbm [resolvable:$true] %s332_s18 }
  0x16   : > { %s1794_s24 = smov (%p38_p6, %s36_s24), 0  ;;  %s308_s26 = sshll.u32 %s1539_s23, 4  ;;  %s309_s26 = int_to_ptr.vmem [resolvable:$true] %s308_s26 }
  0x17   : > { %1181 = dma.hbm_to_vmem [thread:$0]  (!%p1646_p5), %s307_s30, 16, %s309_s26, [#allocation3]  }
  0x18   : > { %s1540_s29 = smov [#allocation6]   ;;  %s358_s19 = sshll.u32 %s1782_s7, 4  ;;  %s359_s19 = int_to_ptr.hbm [resolvable:$true] %s358_s19 }
  0x19   : > { %s334_s12 = sshll.u32 %s1540_s29, 4  ;;  %s382_s25 = sshll.u32 %s1784_s9, 4  ;;  %s335_s12 = int_to_ptr.vmem [resolvable:$true] %s334_s12  ;;  %s383_s25 = int_to_ptr.hbm [resolvable:$true] %s382_s25 }
  0x1a   : > { %1187 = dma.hbm_to_vmem [thread:$0]  (!%p1646_p5), %s333_s18, 16, %s335_s12, [#allocation5]  }
  0x1b   : > { %s1541_s28 = smov [#allocation9]   ;;  %s1542_s30 = smov [#allocation12]  }
  0x1c   : > { %s360_s11 = sshll.u32 %s1541_s28, 4  ;;  %s384_s23 = sshll.u32 %s1542_s30, 4  ;;  %s361_s11 = int_to_ptr.vmem [resolvable:$true] %s360_s11  ;;  %s385_s23 = int_to_ptr.vmem [resolvable:$true] %s384_s23 }
  0x1d   : > { %1193 = dma.hbm_to_vmem [thread:$0]  (!%p1646_p5), %s359_s19, 16, %s361_s11, [#allocation8]  }
  0x1e   : > { %1199 = dma.hbm_to_vmem [thread:$0]  (!%p1646_p5), %s383_s25, 16, %s385_s23, [#allocation11]  }
  0x1f   : > { %414 = sbr.rel (%p1635_p3) target bundleno = 1655 (0x677), region = 60 }
  0x24   : > { %1507 = dma.done.wait (%p1631_p2), [#allocation3], 16  }
  0x25   : > { %1509 = vsyncadd (%p1631_p2), [#allocation3], 4294967280 }
  0x26   : > { %1511 = dma.done.wait (%p1631_p2), [#allocation5], 272  }
  0x27   : > { %1513 = vsyncadd (%p1631_p2), [#allocation5], 4294967024 }
  0x28   : > { %1515 = dma.done.wait (%p1631_p2), [#allocation8], 272  }
  0x29   : > { %1517 = vsyncadd (%p1631_p2), [#allocation8], 4294967024 }
  0x2a   : > { %1519 = dma.done.wait (%p1631_p2), [#allocation11], 32  }
  0x2b   : > { %1521 = vsyncadd (%p1631_p2), [#allocation11], 4294967264  ;;  %p491_p7 = scmp.lt.s32.totalorder %s1524_s13, 1  ;;  %v1145_v0 = vld [vmem:[%s1777_s2 + $0x8] sm:$0xff]  ;;  %v1144_v2 = vld [vmem:[%s1777_s2] sm:$0xff]  ;;  %vm532_vm0 = vcmask 261120  }
  0x2c   : > { %v1147_v1 = vld [vmem:[#allocation4 + $0x8] sm:$0xff]  ;;  %542 = vmatpush.bf16.msra.mxu0 %v1145_v0  ;;  %v1146_v3 = vld [vmem:[#allocation4] sm:$0xff]  ;;  %v1259_v6 = vld [vmem:[#allocation2] ss:$0 sm:$0xff]  ;;  %vm591_vm1 = vcmask 64512   ;;  %s1544_s22 = smov 112  }
  0x2d   : > { %s1796_s13 = smov (!%p491_p7, %s1524_s13), 1  ;;  %574 = vmatpush.bf16.msra.mxu1 %v1147_v1  ;;  %s1545_s25 = smov 104   ;;  %v1260_v26 = vld [vmem:[#allocation6] ss:$0 sm:$0xff]  ;;  %vm631_vm2 = vcmask 1043456   ;;  %vm844_vm3 = vcmask 130048  }
  0x2e   : > { %s1705_s18 = sshll.u32 %s1796_s13, 2  ;;  %s1543_s13 = smov 120   ;;  %vm847_vm4 = vcmask 195584   ;;  %vm927_vm9 = vcmask 257024  }
  0x2f   : > { %s497_s16 = scalar_lea.vmem %s1775_s0, %s1705_s18  ;;  %s501_s4 = scalar_lea.vmem %s1776_s1, %s1705_s18 }
  0x30   : > { %543 = vmatpush.bf16.msra.mxu0 %v1144_v2  ;;  %v1718_v4 = vld [vmem:[%s497_s16] sm:$0xf]  ;;  %s1546_s28 = smov 32   ;;  %s1547_s11 = smov 96  }
  0x31   : > { %575 = vmatpush.bf16.msra.mxu1 %v1146_v3  ;;  %v511_v5 = vld [vmem:[%s501_s4] sm:$0xf]  ;;  %s1548_s30 = smov 88   ;;  %s1549_s23 = smov 80  }
  0x32   : > { %s1550_s21 = smov 72   ;;  %s1551_s27 = smov 8  }
  0x33   : > { %1115 = vmatmul.msk.bf16.vlgmr.msra.gmra.mxu0 %vm532_vm0, %v1718_v4  ;;  %s1552_s26 = smov 16   ;;  %s1553_s29 = smov 24  }
  0x34   : > { %1124 = vmatmul.msk.bf16.vlgmr.msra.gmra.mxu1 %vm532_vm0, %v511_v5  ;;  %s508_s16 = scalar_lea.vmem %s1785_s10, %s1705_s18 }
  0xb0   : > { %v545_v7 = vpop.f32.mrf.mxu0 }
  0xb1   : > { %v577_v8 = vpop.f32.mrf.mxu1  ;;  %v546_v9 = vadd.f32 %v1259_v6, %v545_v7 }
  0xb2   : > { %v589_v10 = vpack.c.bf16 %v577_v8, %v577_v8 }
  0xb3   : > { %v588_v11 = vpack.c.bf16 %v546_v9, %v546_v9 }
  0xb4   : > { %v596_v12 = vsel %vm591_vm1, %v589_v10, 0  ;;  %v655_v13 = vunpack.c.l.b16 %v589_v10 }
  0xb5   : > { %605 = vmatpush.bf16.xpose.msra.mxu2 %v596_v12  ;;  %v650_v15 = vunpack.c.l.b16 %v588_v11 }
  0xb6   : > { %v656_v14 = vpack.c.b16 %v655_v13, %v655_v13 }
  0xb7   : > { %v651_v18 = vpack.c.b16 %v650_v15, %v650_v15 }
  0xb8   : > { %657 = vrot.lane.b32.xlu2 %v656_v14, %s1543_s13  ;;  %v547_v16 = vpop.f32.mrf.mxu0 }
  0xb9   : > { %v579_v17 = vpop.f32.mrf.mxu1 }
  0xbc   : > { %1125 = vmatmul.msk.bf16.vlgmr.msra.gmra.mxu2 %vm591_vm1, %v588_v11 }
  0xc0   : > { %652 = vrot.lane.b32.xlu2 %v651_v18, %s1543_s13 }
  0xc8   : > { %714 = vrot.lane.b32.xlu2 %v656_v14, %s1544_s22 }
  0xd0   : > { %771 = vrot.lane.b32.xlu2 %v656_v14, %s1545_s25 }
  0xd8   : > { %769 = vrot.lane.b32.xlu2 %v651_v18, %s1545_s25 }
 0x112   : > { %v658_v19 = vpop.permute.xlu2 %657 }
 0x113   : > { %v663_v45 = vsel %vm591_vm1, %v658_v19, 0 }
 0x11a   : > { %v653_v20 = vpop.permute.xlu2 %652 }
 0x122   : > { %v715_v21 = vpop.permute.xlu2 %714 }
 0x123   : > { %v720_v22 = vsel %vm591_vm1, %v715_v21, 0 }
 0x124   : > { %729 = vmatpush.bf16.xpose.msrb.mxu1 %v720_v22 }
 0x12a   : > { %v772_v44 = vpop.permute.xlu2 %771 }
 0x12b   : > { %v777_v48 = vsel %vm591_vm1, %v772_v44, 0  ;;  %v1149_v44 = vld [vmem:[#allocation7 + $0x8] sm:$0xff] }
 0x12c   : > { %878 = vmatpush.bf16.msra.mxu1 %v1149_v44 }
 0x132   : > { %v770_v50 = vpop.permute.xlu2 %769 }
 0x13f   : > { %v607_v23 = vpop.f32.mrf.mxu2 }
 0x140   : > { %v611_v24 = vsel %vm591_vm1, %v607_v23, -inf }
 0x141   : > { %612 = vmax.xlane.f32.xlu0 %v611_v24 }
 0x147   : > { %v609_v25 = vpop.f32.mrf.mxu2 }
 0x155   : > { %584 = vrot.lane.b32.xlu0 %v1260_v26, %s1546_s28 }
 0x15d   : > { %712 = vrot.lane.b32.xlu0 %v651_v18, %s1544_s22 }
 0x1b4   : > { %v613_v27 = vpop.xlane.xlu0 %612 }
 0x1b5   : > { %v614_v28 = vsub.f32 %v607_v23, %v613_v27 }
 0x1b7   : > { %v615_v29 = vmul.f32 1.442695, %v614_v28 }
 0x1b9   : > { %1264 = vpow2.f32 %v615_v29 }
 0x1bf   : > { %v1265_v30 = vpop.eup %1264 }
 0x1c0   : > { %v617_v31 = vsel %vm591_vm1, %v1265_v30, 0.0 }
 0x1c1   : > { %618 = vadd.xlane.f32.xlu1 %v617_v31 }
 0x1c7   : > { %v585_v32 = vpop.permute.xlu0 %584 }
 0x1c8   : > { %v587_v33 = vadd.f32 %v585_v32, %v577_v8 }
 0x1ca   : > { %v590_v35 = vpack.c.bf16 %v587_v33, %v587_v33 }
 0x1cc   : > { %v624_v36 = vunpack.c.l.b16 %v590_v35 }
 0x1ce   : > { %v1729_v37 = vpack.c.b16 %v624_v36, %v624_v36 }
 0x1cf   : > { %v713_v34 = vpop.permute.xlu0 %712 }
 0x1d0   : > { %1129 = vmatmul.msk.bf16.vlgmr.msrb.gmra.mxu1 %vm591_vm1, %v713_v34 }
 0x1da   : > { %626 = vrot.lane.b32.xlu1 %v1729_v37, %s1547_s11 }
 0x234   : > { %v619_v38 = vpop.xlane.xlu1 %618 }
 0x235   : > { %1266 = vrcp.f32 %v619_v38 }
 0x23b   : > { %v1267_v39 = vpop.eup %1266 }
 0x23c   : > { %v621_v40 = vmul.f32 %v1267_v39, %v1265_v30 }
 0x23e   : > { %v622_v47 = vpack.c.bf16 %v621_v40, %v621_v40 }
 0x24c   : > { %v627_v41 = vpop.permute.xlu1 %626 }
 0x24d   : > { %v731_v42 = vpop.f32.mrf.mxu1  ;;  %v633_v43 = vsel %vm631_vm2, %v627_v41, 0 }
 0x24e   : > { %642 = vmatpush.bf16.msra.mxu3 %v633_v43  ;;  %v735_v46 = vsel %vm591_vm1, %v731_v42, -inf }
 0x24f   : > { %736 = vmax.xlane.f32.xlu0 %v735_v46 }
 0x251   : > { %1126 = vmatmul.msk.bf16.vlgmr.msra.gmra.mxu3 %vm591_vm1, %v622_v47 }
 0x252   : > { %672 = vmatpush.bf16.xpose.msrb.mxu3 %v663_v45  ;;  %v1148_v45 = vld [vmem:[#allocation7] sm:$0xff] }
 0x253   : > { %879 = vmatpush.bf16.msra.mxu1 %v1148_v45 }
 0x255   : > { %v733_v49 = vpop.f32.mrf.mxu1 }
 0x25a   : > { %786 = vmatpush.bf16.xpose.msra.mxu3 %v777_v48 }
 0x261   : > { %1127 = vmatmul.msk.bf16.vlgmr.msrb.gmra.mxu3 %vm591_vm1, %v653_v20 }
 0x263   : > { %690 = vrot.lane.b32.xlu0 %v1729_v37, %s1548_s30 }
 0x271   : > { %1131 = vmatmul.msk.bf16.vlgmr.msra.gmra.mxu3 %vm591_vm1, %v770_v50 }
 0x2c2   : > { %v737_v51 = vpop.xlane.xlu0 %736 }
 0x2c3   : > { %v738_v58 = vsub.f32 %v731_v42, %v737_v51 }
 0x2c5   : > { %v739_v60 = vmul.f32 1.442695, %v738_v58 }
 0x2c7   : > { %1268 = vpow2.f32 %v739_v60  ;;  %v1554_v60 = vmov 32.0  }
 0x2cd   : > { %v1269_v63 = vpop.eup %1268 }
 0x2ce   : > { %v741_v1 = vsel %vm591_vm1, %v1269_v63, 0.0 }
 0x2d4   : > { %v1740_v52 = vpop.f32.mrf.mxu3 }
 0x2d5   : > { %v691_v53 = vpop.permute.xlu0 %690  ;;  %v648_v47 = vpack.c.bf16 %v1740_v52, %v1740_v52 }
 0x2d6   : > { %v696_v54 = vsel %vm631_vm2, %v691_v53, 0 }
 0x2d7   : > { %705 = vmatpush.bf16.msrb.mxu0 %v696_v54  ;;  %v1261_v54 = vld [vmem:[#allocation9] ss:$0 sm:$0xff] }
 0x2dc   : > { %v646_v55 = vpop.f32.mrf.mxu3 }
 0x2dd   : > { %v885_v55 = vunpack.c.l.bf16 %v1718_v4 }
 0x2e4   : > { %v674_v56 = vpop.f32.mrf.mxu3 }
 0x2e5   : > { %v678_v57 = vsel %vm591_vm1, %v674_v56, -inf }
 0x2e6   : > { %679 = vmax.xlane.f32.xlu1 %v678_v57 }
 0x2ec   : > { %v676_v59 = vpop.f32.mrf.mxu3 }
 0x2f4   : > { %v788_v61 = vpop.f32.mrf.mxu3 }
 0x2f5   : > { %v792_v62 = vsel %vm591_vm1, %v788_v61, -inf }
 0x2f6   : > { %793 = vmax.xlane.f32.xlu2 %v792_v62 }
 0x2fc   : > { %v790_v0 = vpop.f32.mrf.mxu3 }
 0x2fe   : > { %742 = vadd.xlane.f32.xlu2 %v741_v1 }
 0x316   : > { %747 = vrot.lane.b32.xlu2 %v1729_v37, %s1549_s23 }
 0x359   : > { %v680_v2 = vpop.xlane.xlu1 %679 }
 0x35a   : > { %v681_v3 = vsub.f32 %v674_v56, %v680_v2 }
 0x35c   : > { %v682_v5 = vmul.f32 1.442695, %v681_v3 }
 0x35e   : > { %1270 = vpow2.f32 %v682_v5 }
 0x364   : > { %v1271_v6 = vpop.eup %1270 }
 0x365   : > { %v684_v7 = vsel %vm591_vm1, %v1271_v6, 0.0 }
 0x366   : > { %685 = vadd.xlane.f32.xlu1 %v684_v7 }
 0x369   : > { %v794_v8 = vpop.xlane.xlu2 %793 }
 0x36a   : > { %v795_v9 = vsub.f32 %v788_v61, %v794_v8 }
 0x36c   : > { %v796_v10 = vmul.f32 1.442695, %v795_v9 }
 0x36e   : > { %1272 = vpow2.f32 %v796_v10 }
 0x371   : > { %v743_v11 = vpop.xlane.xlu2 %742 }
 0x372   : > { %1274 = vrcp.f32 %v743_v11 }
 0x374   : > { %v1273_v12 = vpop.eup %1272 }
 0x375   : > { %v798_v13 = vsel %vm591_vm1, %v1273_v12, 0.0 }
 0x376   : > { %799 = vadd.xlane.f32.xlu1 %v798_v13 }
 0x378   : > { %v1275_v14 = vpop.eup %1274 }
 0x379   : > { %v745_v15 = vmul.f32 %v1275_v14, %v1269_v63  ;;  %v748_v16 = vpop.permute.xlu2 %747 }
 0x37a   : > { %v753_v17 = vsel %vm631_vm2, %v748_v16, 0 }
 0x37b   : > { %762 = vmatpush.bf16.msrb.mxu2 %v753_v17  ;;  %v746_v18 = vpack.c.bf16 %v745_v15, %v745_v15  ;;  %v1262_v17 = vld [vmem:[#allocation10] ss:$0 sm:$0xff] }
 0x37e   : > { %1130 = vmatmul.msk.bf16.vlgmr.msrb.gmra.mxu2 %vm591_vm1, %v746_v18 }
 0x38f   : > { %804 = vrot.lane.b32.xlu1 %v1729_v37, %s1550_s21 }
 0x3d9   : > { %v686_v19 = vpop.xlane.xlu1 %685 }
 0x3da   : > { %1276 = vrcp.f32 %v686_v19  ;;  %v1263_v19 = vld [vmem:[#allocation12] ss:$0 sm:$0xff] }
 0x3e0   : > { %v1277_v20 = vpop.eup %1276 }
 0x3e1   : > { %v688_v21 = vmul.f32 %v1277_v20, %v1271_v6 }
 0x3e3   : > { %v689_v22 = vpack.c.bf16 %v688_v21, %v688_v21 }
 0x3e5   : > { %1128 = vmatmul.msk.bf16.vlgmr.msrb.gmra.mxu0 %vm591_vm1, %v689_v22 }
 0x3e9   : > { %v800_v23 = vpop.xlane.xlu1 %799 }
 0x3ea   : > { %1278 = vrcp.f32 %v800_v23 }
 0x3eb   : > { %1280 = vrcp.f32 %v1554_v60 }
 0x3f0   : > { %v1279_v24 = vpop.eup %1278 }
 0x3f1   : > { %v802_v25 = vmul.f32 %v1279_v24, %v1273_v12  ;;  %v1281_v61 = vpop.eup %1280 }
 0x3f2   : > { %v891_v62 = vmul.f32 32.0, %v1281_v61  ;;  %vm895_vm5 = vweird.f32 %v1281_v61 }
 0x3f3   : > { %v803_v29 = vpack.c.bf16 %v802_v25, %v802_v25 }
 0x3f4   : > { %v892_v63 = vsub.f32 1.0, %v891_v62 }
 0x3f6   : > { %v893_v0 = vmul.f32 %v1281_v61, %v892_v63 }
 0x3f8   : > { %v894_v1 = vadd.f32 %v1281_v61, %v893_v0 }
 0x3fa   : > { %v896_v2 = vsel %vm895_vm5, %v1281_v61, %v894_v1 }
 0x401   : > { %v805_v26 = vpop.permute.xlu1 %804  ;;  %v764_v27 = vpop.f32.mrf.mxu2 }
 0x402   : > { %v810_v28 = vsel %vm631_vm2, %v805_v26, 0  ;;  %v768_v34 = vpack.c.bf16 %v764_v27, %v764_v27 }
 0x403   : > { %819 = vmatpush.bf16.msra.mxu0 %v810_v28 }
 0x404   : > { %v832_v37 = vunpack.c.l.b16 %v768_v34 }
 0x406   : > { %1132 = vmatmul.msk.bf16.vlgmr.msra.gmra.mxu0 %vm591_vm1, %v803_v29  ;;  %v833_v38 = vpack.c.b16 %v832_v37, %v832_v37 }
 0x409   : > { %v766_v30 = vpop.f32.mrf.mxu2 }
 0x462   : > { %v707_v31 = vpop.f32.mrf.mxu0 }
 0x463   : > { %v711_v32 = vpack.c.bf16 %v707_v31, %v707_v31 }
 0x465   : > { %v827_v33 = vunpack.c.l.b16 %v711_v32 }
 0x467   : > { %v828_v35 = vpack.c.b16 %v827_v33, %v827_v33 }
 0x469   : > { %829 = vrot.lane.b32.xlu0 %v828_v35, %s1551_s27 }
 0x46a   : > { %v709_v36 = vpop.f32.mrf.mxu0 }
 0x471   : > { %834 = vrot.lane.b32.xlu0 %v833_v38, %s1552_s26 }
 0x483   : > { %v821_v39 = vpop.f32.mrf.mxu0 }
 0x484   : > { %v825_v40 = vpack.c.bf16 %v821_v39, %v821_v39 }
 0x486   : > { %v837_v41 = vunpack.c.l.b16 %v825_v40 }
 0x488   : > { %v838_v42 = vpack.c.b16 %v837_v41, %v837_v41 }
 0x48a   : > { %839 = vrot.lane.b32.xlu2 %v838_v42, %s1553_s29 }
 0x48b   : > { %v823_v43 = vpop.f32.mrf.mxu0 }
 0x4db   : > { %v830_v46 = vpop.permute.xlu0 %829 }
 0x4dc   : > { %v843_v48 = vsel %vm591_vm1, %v648_v47, %v830_v46 }
 0x4e3   : > { %v835_v49 = vpop.permute.xlu0 %834 }
 0x4e4   : > { %v846_v50 = vsel %vm844_vm3, %v843_v48, %v835_v49  ;;  %v840_v51 = vpop.permute.xlu2 %839 }
 0x4e5   : > { %v849_v53 = vsel %vm847_vm4, %v846_v50, %v840_v51 }
 0x4e6   : > { %1141 = vmatmul.msk.bf16.vlgmr.msra.gmra.mxu1 %vm532_vm0, %v849_v53 }
 0x563   : > { %v881_v56 = vpop.f32.mrf.mxu1 }
 0x564   : > { %v882_v57 = vadd.f32 %v1261_v54, %v881_v56 }
 0x566   : > { %v886_v58 = vadd.f32 %v885_v55, %v882_v57 }
 0x568   : > { %v887_v59 = vsel %vm532_vm0, %v886_v58, 0.0 }
 0x569   : > { %888 = vadd.xlane.f32.xlu0 %v887_v59 }
 0x56b   : > { %v883_v52 = vpop.f32.mrf.mxu1 }
 0x5dc   : > { %v889_v3 = vpop.xlane.xlu0 %888 }
 0x5dd   : > { %v897_v5 = vmul.f32 %v896_v2, %v889_v3 }
 0x5df   : > { %v898_v6 = vsub.f32 %v886_v58, %v897_v5 }
 0x5e1   : > { %v899_v4 = vmul.f32 %v898_v6, %v898_v6 }
 0x5e3   : > { %v900_v7 = vsel %vm532_vm0, %v899_v4, 0.0 }
 0x5e4   : > { %901 = vadd.xlane.f32.xlu1 %v900_v7 }
 0x657   : > { %v902_v8 = vpop.xlane.xlu1 %901 }
 0x658   : > { %v903_v9 = vmul.f32 %v902_v8, %v896_v2 }
 0x65a   : > { %v904_v10 = vadd.f32 1e-05, %v903_v9 }
 0x65c   : > { %1282 = vrsqrt.f32 %v904_v10  ;;  %vm911_vm7 = vweird.f32 %v904_v10 }
 0x662   : > { %v1283_v11 = vpop.eup %1282 }
 0x663   : > { %v906_v12 = vmul.f32 %v1283_v11, %v904_v10  ;;  %vm912_vm6 = vweird.f32 %v1283_v11 }
 0x664   : > { %vm913_vm8 = vmor %vm911_vm7, %vm912_vm6 }
 0x665   : > { %v907_v13 = vmul.f32 %v1283_v11, %v906_v12 }
 0x667   : > { %v908_v14 = vmul.f32 0.5, %v907_v13 }
 0x669   : > { %v909_v15 = vsub.f32 1.5, %v908_v14 }
 0x66b   : > { %v910_v16 = vmul.f32 %v1283_v11, %v909_v15 }
 0x66d   : > { %v914_v18 = vsel %vm913_vm8, %v1283_v11, %v910_v16 }
 0x66e   : > { %v915_v20 = vmul.f32 %v914_v18, %v898_v6 }
 0x670   : > { %v920_v21 = vmul.f32 %v1262_v17, %v915_v20 }
 0x672   : > { %v925_v22 = vadd.f32 %v1263_v19, %v920_v21 }
 0x674   : > { %v926_v23 = vpack.c.bf16 %v925_v22, %v925_v22 }
 0x676   : > { %928 = vst.msk [vmem:[%s508_s16] sm:$0xf] %vm927_vm9, %v926_v23 }
 0x677 PF: > { %s24_s15 = sadd.s32 1, %s1532_s15   ;;  %s1791_s13 = smov %s1528_s14 }
 0x678   : > { %p21_p8 = scmp.ge.s32.totalorder %s24_s15, 4   ;;  %s1792_s14 = smov %s1794_s24 }
 0x67a   :  { %23 = sbr.rel (!%p21_p8) target bundleno = 7 (0x7), region = 122 }
 0x67f   :  { %954 = vsyncpa [#allocation3], 1 }
 0x680   :  { %956 = vsyncpa [#allocation3 + $0x1], 1 }
 0x681   :  { %957 = vsyncpa [#allocation5], 1 }
 0x682   :  { %958 = vsyncpa [#allocation8], 1 }
 0x683   :  { %959 = vsyncpa [#allocation11], 1 }

// kernel: transformer_encoder.5
= control target key start
LH: loop header
LB: loop body
LE: loop exit
PB: predicated region body
PF: predicated region fallthrough
CT: control target
= control target key end

     0   :  { %12 = vsyncpa [#allocation3], 0  ;;  %s427_s0 = inlined_call_operand.vmem [shape: bf16[16,32], index: 0, kind: input, shape index: {}]   ;;  %s428_s1 = inlined_call_operand.vmem [shape: bf16[32,64], index: 1, kind: input, shape index: {}]   ;;  %s429_s2 = inlined_call_operand.vmem [shape: f32[1,64], index: 2, kind: input, shape index: {}]   ;;  %s430_s3 = inlined_call_operand.vmem [shape: bf16[64,32], index: 3, kind: input, shape index: {}]   ;;  %s431_s4 = inlined_call_operand.vmem [shape: f32[1,32], index: 4, kind: input, shape index: {}]   ;;  %s432_s5 = inlined_call_operand.hbm [shape: f32[1,32], index: 5, kind: input, shape index: {}]   ;;  %s433_s6 = inlined_call_operand.hbm [shape: f32[1,32], index: 6, kind: input, shape index: {}]   ;;  %s434_s7 = inlined_call_operand.vmem [shape: bf16[16,32], index: 7, kind: output, shape index: {}]  }
   0x1   :  { %s29_s26 = sshll.u32 %s432_s5, 4  ;;  %s30_s26 = int_to_ptr.hbm [resolvable:$true] %s29_s26 }
   0x2   :  { %13 = vsyncpa [#allocation5], 0  ;;  %s337_s27 = smov [#allocation2]   ;;  %s40_s8 = sshll.u32 %s433_s6, 4  ;;  %s41_s8 = int_to_ptr.hbm [resolvable:$true] %s40_s8 }
   0x3   :  { %s31_s28 = sshll.u32 %s337_s27, 4  ;;  %s338_s9 = smov [#allocation4]   ;;  %s32_s28 = int_to_ptr.vmem [resolvable:$true] %s31_s28 }
   0x4   :  { %34 = dma.hbm_to_vmem [thread:$0]  %s30_s26, 16, %s32_s28, [#allocation3]  }
   0x5   :  { %s42_s10 = sshll.u32 %s338_s9, 4  ;;  %s43_s10 = int_to_ptr.vmem [resolvable:$true] %s42_s10 }
   0x6   :  { %45 = dma.hbm_to_vmem [thread:$0]  %s41_s8, 16, %s43_s10, [#allocation5]  }
   0x7   :  { %333 = dma.done.wait [#allocation3], 16  }
   0x8   :  { %334 = vsyncadd [#allocation3], 4294967280 }
   0x9   :  { %335 = dma.done.wait [#allocation5], 16  }
   0xa   :  { %336 = vsyncadd [#allocation5], 4294967280  ;;  %v267_v0 = vld [vmem:[%s428_s1 + $0x8] sm:$0xff]  ;;  %v266_v1 = vld [vmem:[%s428_s1] sm:$0xff]  ;;  %vm82_vm0 = vcmask 261120   ;;  %vm139_vm1 = vcmask 523264  }
   0xb   :  { %92 = vmatpush.bf16.msra.mxu0 %v267_v0  ;;  %v265_v2 = vld [vmem:[%s427_s0] sm:$0xff]  ;;  %v271_v3 = vld [vmem:[%s430_s3 + $0x18] sm:$0xff]  ;;  %v270_v4 = vld [vmem:[%s430_s3 + $0x10] sm:$0xff]  ;;  %v339_v27 = vmov 32.0   ;;  %vm226_vm7 = vcmask 257024  }
   0xc   :  { %147 = vmatpush.bf16.msra.mxu1 %v271_v3  ;;  %v269_v5 = vld [vmem:[%s430_s3 + $0x8] sm:$0xff]  ;;  %v268_v6 = vld [vmem:[%s430_s3] sm:$0xff]  ;;  %279 = vrcp.f32 %v339_v27 }
   0xd   :  { %v275_v8 = vld [vmem:[%s429_s2] ss:$0 sm:$0xff]  ;;  %v278_v61 = vld [vmem:[#allocation4] ss:$0 sm:$0xff] }
   0xe   :  { %v55_v15 = vld [vmem:[%s427_s0] sm:$0xff]  }
   0xf   :  { %93 = vmatpush.bf16.msra.mxu0 %v266_v1  ;;  %v276_v16 = vld [vmem:[%s431_s4] ss:$0 sm:$0xff]  ;;  %v157_v17 = vunpack.c.l.bf16 %v55_v15  ;;  %v158_v22 = vunpack.c.h.bf16 %v55_v15 }
  0x10   :  { %148 = vmatpush.bf16.msra.mxu1 %v270_v4  ;;  %v277_v58 = vld [vmem:[#allocation2] ss:$0 sm:$0xff] }
  0x12   :  { %247 = vmatmul.msk.bf16.vlgmr.msra.gmra.mxu0 %vm82_vm0, %v265_v2  ;;  %v280_v28 = vpop.eup %279 }
  0x13   :  { %v168_v29 = vmul.f32 32.0, %v280_v28  ;;  %vm172_vm2 = vweird.f32 %v280_v28 }
  0x14   :  { %149 = vmatpush.bf16.msra.mxu1 %v269_v5 }
  0x15   :  { %v169_v30 = vsub.f32 1.0, %v168_v29 }
  0x17   :  { %v170_v31 = vmul.f32 %v280_v28, %v169_v30 }
  0x18   :  { %150 = vmatpush.bf16.msra.mxu1 %v268_v6 }
  0x19   :  { %v171_v32 = vadd.f32 %v280_v28, %v170_v31 }
  0x1b   :  { %v173_v33 = vsel %vm172_vm2, %v280_v28, %v171_v32 }
  0x8f   :  { %v95_v7 = vpop.f32.mrf.mxu0 }
  0x90   :  { %v96_v9 = vadd.f32 %v275_v8, %v95_v7 }
  0x92   :  { %v100_v12 = vmax.f32 %v96_v9, 0.0 }
  0x97   :  { %v97_v10 = vpop.f32.mrf.mxu0 }
  0x98   :  { %v98_v11 = vadd.f32 %v275_v8, %v97_v10 }
  0x9a   :  { %v101_v13 = vmax.f32 %v98_v11, 0.0 }
  0x9c   :  { %v102_v14 = vpack.c.bf16 %v101_v13, %v100_v12 }
  0x9e   :  { %264 = vmatmul.msk.bf16.vlgmr.msra.gmra.mxu1 %vm139_vm1, %v102_v14 }
 0x11b   :  { %v152_v18 = vpop.f32.mrf.mxu1 }
 0x11c   :  { %v153_v19 = vadd.f32 %v276_v16, %v152_v18 }
 0x11e   :  { %v159_v20 = vadd.f32 %v157_v17, %v153_v19 }
 0x120   :  { %v161_v21 = vsel %vm82_vm0, %v159_v20, 0.0 }
 0x121   :  { %162 = vadd.xlane.f32.xlu0 %v161_v21 }
 0x123   :  { %v154_v23 = vpop.f32.mrf.mxu1 }
 0x124   :  { %v155_v24 = vadd.f32 %v276_v16, %v154_v23 }
 0x126   :  { %v160_v25 = vadd.f32 %v158_v22, %v155_v24 }
 0x128   :  { %v164_v26 = vsel %vm82_vm0, %v160_v25, 0.0 }
 0x129   :  { %165 = vadd.xlane.f32.xlu0 %v164_v26 }
 0x194   :  { %v163_v34 = vpop.xlane.xlu0 %162 }
 0x195   :  { %v174_v35 = vmul.f32 %v173_v33, %v163_v34 }
 0x197   :  { %v176_v36 = vsub.f32 %v159_v20, %v174_v35 }
 0x199   :  { %v178_v37 = vmul.f32 %v176_v36, %v176_v36 }
 0x19b   :  { %v180_v38 = vsel %vm82_vm0, %v178_v37, 0.0 }
 0x19c   :  { %181 = vadd.xlane.f32.xlu1 %v180_v38  ;;  %v166_v39 = vpop.xlane.xlu0 %165 }
 0x19d   :  { %v175_v40 = vmul.f32 %v173_v33, %v166_v39 }
 0x19f   :  { %v177_v41 = vsub.f32 %v160_v25, %v175_v40 }
 0x1a1   :  { %v179_v42 = vmul.f32 %v177_v41, %v177_v41 }
 0x1a3   :  { %v183_v43 = vsel %vm82_vm0, %v179_v42, 0.0 }
 0x1a4   :  { %184 = vadd.xlane.f32.xlu1 %v183_v43 }
 0x20f   :  { %v182_v44 = vpop.xlane.xlu1 %181 }
 0x210   :  { %v186_v45 = vmul.f32 %v182_v44, %v173_v33 }
 0x212   :  { %v188_v46 = vadd.f32 1e-05, %v186_v45 }
 0x214   :  { %281 = vrsqrt.f32 %v188_v46  ;;  %vm196_vm4 = vweird.f32 %v188_v46 }
 0x217   :  { %v185_v47 = vpop.xlane.xlu1 %184 }
 0x218   :  { %v187_v48 = vmul.f32 %v185_v47, %v173_v33 }
 0x21a   :  { %v282_v49 = vpop.eup %281  ;;  %v189_v50 = vadd.f32 1e-05, %v187_v48 }
 0x21b   :  { %v191_v51 = vmul.f32 %v282_v49, %v188_v46  ;;  %vm197_vm3 = vweird.f32 %v282_v49 }
 0x21c   :  { %283 = vrsqrt.f32 %v189_v50  ;;  %vm198_vm5 = vmor %vm196_vm4, %vm197_vm3  ;;  %vm206_vm8 = vweird.f32 %v189_v50 }
 0x21d   :  { %v192_v52 = vmul.f32 %v282_v49, %v191_v51 }
 0x21f   :  { %v193_v53 = vmul.f32 0.5, %v192_v52 }
 0x221   :  { %v194_v54 = vsub.f32 1.5, %v193_v53 }
 0x222   :  { %v284_v55 = vpop.eup %283 }
 0x223   :  { %v195_v56 = vmul.f32 %v282_v49, %v194_v54  ;;  %v201_v57 = vmul.f32 %v284_v55, %v189_v50  ;;  %vm207_vm6 = vweird.f32 %v284_v55 }
 0x224   :  { %vm208_vm9 = vmor %vm206_vm8, %vm207_vm6 }
 0x225   :  { %v199_v59 = vsel %vm198_vm5, %v282_v49, %v195_v56  ;;  %v202_v60 = vmul.f32 %v284_v55, %v201_v57 }
 0x226   :  { %v210_v62 = vmul.f32 %v199_v59, %v176_v36 }
 0x227   :  { %v203_v63 = vmul.f32 0.5, %v202_v60 }
 0x228   :  { %v216_v0 = vmul.f32 %v277_v58, %v210_v62 }
 0x229   :  { %v204_v1 = vsub.f32 1.5, %v203_v63 }
 0x22a   :  { %v222_v2 = vadd.f32 %v278_v61, %v216_v0 }
 0x22b   :  { %v205_v3 = vmul.f32 %v284_v55, %v204_v1 }
 0x22c   :  { %v224_v4 = vpack.c.bf16 %v222_v2, %v222_v2 }
 0x22d   :  { %v209_v5 = vsel %vm208_vm9, %v284_v55, %v205_v3 }
 0x22e   :  { %227 = vst.msk [vmem:[%s434_s7] sm:$0xf] %vm226_vm7, %v224_v4  ;;  %v211_v6 = vmul.f32 %v209_v5, %v177_v41 }
 0x230   :  { %v217_v7 = vmul.f32 %v277_v58, %v211_v6 }
 0x232   :  { %v223_v8 = vadd.f32 %v278_v61, %v217_v7 }
 0x234   :  { %v225_v9 = vpack.c.bf16 %v223_v8, %v223_v8 }
 0x236   :  { %228 = vst.msk [vmem:[%s434_s7 + $0x4] sm:$0xf] %vm226_vm7, %v225_v9 }
 0x237   :  { %233 = vsyncpa [#allocation3], 1 }
 0x238   :  { %234 = vsyncpa [#allocation5], 1 }

// kernel: transformer_encoder.7
= control target key start
LH: loop header
LB: loop body
LE: loop exit
PB: predicated region body
PF: predicated region fallthrough
CT: control target
= control target key end

     0   :  { %vm54_vm0 = vcmask 261120   ;;  %vm111_vm1 = vcmask 523264   ;;  %v253_v27 = vmov 32.0   ;;  %vm198_vm7 = vcmask 257024   ;;  %s341_s1 = inlined_call_operand.vmem [shape: bf16[32,64], index: 1, kind: input, shape index: {}]   ;;  %s342_s2 = inlined_call_operand.vmem [shape: f32[1,64], index: 2, kind: input, shape index: {}]   ;;  %s343_s0 = inlined_call_operand.vmem [shape: bf16[16,32], index: 0, kind: input, shape index: {}]   ;;  %s344_s4 = inlined_call_operand.vmem [shape: f32[1,32], index: 4, kind: input, shape index: {}]   ;;  %s345_s3 = inlined_call_operand.vmem [shape: bf16[64,32], index: 3, kind: input, shape index: {}]   ;;  %s346_s5 = inlined_call_operand.vmem [shape: f32[1,32], index: 5, kind: input, shape index: {}]   ;;  %s347_s6 = inlined_call_operand.vmem [shape: f32[1,32], index: 6, kind: input, shape index: {}]   ;;  %s348_s7 = inlined_call_operand.vmem [shape: bf16[16,32], index: 7, kind: output, shape index: {}]  }
   0x1   :  { %v237_v0 = vld [vmem:[%s341_s1 + $0x8] sm:$0xff]  ;;  %v236_v1 = vld [vmem:[%s341_s1] sm:$0xff]  ;;  %v241_v3 = vld [vmem:[%s345_s3 + $0x18] sm:$0xff]  ;;  %247 = vrcp.f32 %v253_v27 }
   0x2   :  { %64 = vmatpush.bf16.msra.mxu0 %v237_v0  ;;  %v235_v2 = vld [vmem:[%s343_s0] sm:$0xff]  ;;  %119 = vmatpush.bf16.msra.mxu1 %v241_v3  ;;  %v240_v4 = vld [vmem:[%s345_s3 + $0x10] sm:$0xff]  ;;  %v239_v5 = vld [vmem:[%s345_s3 + $0x8] sm:$0xff] }
   0x3   :  { %v238_v6 = vld [vmem:[%s345_s3] sm:$0xff] }
   0x4   :  { %v243_v8 = vld [vmem:[%s342_s2] ss:$0 sm:$0xff] }
   0x5   :  { %v27_v15 = vld [vmem:[%s343_s0] sm:$0xff]  }
   0x6   :  { %65 = vmatpush.bf16.msra.mxu0 %v236_v1  ;;  %120 = vmatpush.bf16.msra.mxu1 %v240_v4  ;;  %v244_v16 = vld [vmem:[%s344_s4] ss:$0 sm:$0xff]  ;;  %v129_v17 = vunpack.c.l.bf16 %v27_v15  ;;  %v130_v22 = vunpack.c.h.bf16 %v27_v15 }
   0x7   :  { %v248_v28 = vpop.eup %247  ;;  %v245_v58 = vld [vmem:[%s346_s5] ss:$0 sm:$0xff] }
   0x8   :  { %v140_v29 = vmul.f32 32.0, %v248_v28  ;;  %vm144_vm2 = vweird.f32 %v248_v28  ;;  %v246_v61 = vld [vmem:[%s347_s6] ss:$0 sm:$0xff] }
   0x9   :  { %217 = vmatmul.msk.bf16.vlgmr.msra.gmra.mxu0 %vm54_vm0, %v235_v2 }
   0xa   :  { %121 = vmatpush.bf16.msra.mxu1 %v239_v5  ;;  %v141_v30 = vsub.f32 1.0, %v140_v29 }
   0xc   :  { %v142_v31 = vmul.f32 %v248_v28, %v141_v30 }
   0xe   :  { %122 = vmatpush.bf16.msra.mxu1 %v238_v6  ;;  %v143_v32 = vadd.f32 %v248_v28, %v142_v31 }
  0x10   :  { %v145_v33 = vsel %vm144_vm2, %v248_v28, %v143_v32 }
  0x86   :  { %v67_v7 = vpop.f32.mrf.mxu0 }
  0x87   :  { %v68_v9 = vadd.f32 %v243_v8, %v67_v7 }
  0x89   :  { %v72_v12 = vmax.f32 %v68_v9, 0.0 }
  0x8e   :  { %v69_v10 = vpop.f32.mrf.mxu0 }
  0x8f   :  { %v70_v11 = vadd.f32 %v243_v8, %v69_v10 }
  0x91   :  { %v73_v13 = vmax.f32 %v70_v11, 0.0 }
  0x93   :  { %v74_v14 = vpack.c.bf16 %v73_v13, %v72_v12 }
  0x95   :  { %234 = vmatmul.msk.bf16.vlgmr.msra.gmra.mxu1 %vm111_vm1, %v74_v14 }
 0x112   :  { %v124_v18 = vpop.f32.mrf.mxu1 }
 0x113   :  { %v125_v19 = vadd.f32 %v244_v16, %v124_v18 }
 0x115   :  { %v131_v20 = vadd.f32 %v129_v17, %v125_v19 }
 0x117   :  { %v133_v21 = vsel %vm54_vm0, %v131_v20, 0.0 }
 0x118   :  { %134 = vadd.xlane.f32.xlu0 %v133_v21 }
 0x11a   :  { %v126_v23 = vpop.f32.mrf.mxu1 }
 0x11b   :  { %v127_v24 = vadd.f32 %v244_v16, %v126_v23 }
 0x11d   :  { %v132_v25 = vadd.f32 %v130_v22, %v127_v24 }
 0x11f   :  { %v136_v26 = vsel %vm54_vm0, %v132_v25, 0.0 }
 0x120   :  { %137 = vadd.xlane.f32.xlu0 %v136_v26 }
 0x18b   :  { %v135_v34 = vpop.xlane.xlu0 %134 }
 0x18c   :  { %v146_v35 = vmul.f32 %v145_v33, %v135_v34 }
 0x18e   :  { %v148_v36 = vsub.f32 %v131_v20, %v146_v35 }
 0x190   :  { %v150_v37 = vmul.f32 %v148_v36, %v148_v36 }
 0x192   :  { %v152_v38 = vsel %vm54_vm0, %v150_v37, 0.0 }
 0x193   :  { %153 = vadd.xlane.f32.xlu1 %v152_v38  ;;  %v138_v39 = vpop.xlane.xlu0 %137 }
 0x194   :  { %v147_v40 = vmul.f32 %v145_v33, %v138_v39 }
 0x196   :  { %v149_v41 = vsub.f32 %v132_v25, %v147_v40 }
 0x198   :  { %v151_v42 = vmul.f32 %v149_v41, %v149_v41 }
 0x19a   :  { %v155_v43 = vsel %vm54_vm0, %v151_v42, 0.0 }
 0x19b   :  { %156 = vadd.xlane.f32.xlu1 %v155_v43 }
 0x206   :  { %v154_v44 = vpop.xlane.xlu1 %153 }
 0x207   :  { %v158_v45 = vmul.f32 %v154_v44, %v145_v33 }
 0x209   :  { %v160_v46 = vadd.f32 1e-05, %v158_v45 }
 0x20b   :  { %249 = vrsqrt.f32 %v160_v46  ;;  %vm168_vm4 = vweird.f32 %v160_v46 }
 0x20e   :  { %v157_v47 = vpop.xlane.xlu1 %156 }
 0x20f   :  { %v159_v48 = vmul.f32 %v157_v47, %v145_v33 }
 0x211   :  { %v250_v49 = vpop.eup %249  ;;  %v161_v50 = vadd.f32 1e-05, %v159_v48 }
 0x212   :  { %v163_v51 = vmul.f32 %v250_v49, %v160_v46  ;;  %vm169_vm3 = vweird.f32 %v250_v49 }
 0x213   :  { %251 = vrsqrt.f32 %v161_v50  ;;  %vm170_vm5 = vmor %vm168_vm4, %vm169_vm3  ;;  %vm178_vm8 = vweird.f32 %v161_v50 }
 0x214   :  { %v164_v52 = vmul.f32 %v250_v49, %v163_v51 }
 0x216   :  { %v165_v53 = vmul.f32 0.5, %v164_v52 }
 0x218   :  { %v166_v54 = vsub.f32 1.5, %v165_v53 }
 0x219   :  { %v252_v55 = vpop.eup %251 }
 0x21a   :  { %v167_v56 = vmul.f32 %v250_v49, %v166_v54  ;;  %v173_v57 = vmul.f32 %v252_v55, %v161_v50  ;;  %vm179_vm6 = vweird.f32 %v252_v55 }
 0x21b   :  { %vm180_vm9 = vmor %vm178_vm8, %vm179_vm6 }
 0x21c   :  { %v171_v59 = vsel %vm170_vm5, %v250_v49, %v167_v56  ;;  %v174_v60 = vmul.f32 %v252_v55, %v173_v57 }
 0x21d   :  { %v182_v62 = vmul.f32 %v171_v59, %v148_v36 }
 0x21e   :  { %v175_v63 = vmul.f32 0.5, %v174_v60 }
 0x21f   :  { %v188_v0 = vmul.f32 %v245_v58, %v182_v62 }
 0x220   :  { %v176_v1 = vsub.f32 1.5, %v175_v63 }
 0x221   :  { %v194_v2 = vadd.f32 %v246_v61, %v188_v0 }
 0x222   :  { %v177_v3 = vmul.f32 %v252_v55, %v176_v1 }
 0x223   :  { %v196_v4 = vpack.c.bf16 %v194_v2, %v194_v2 }
 0x224   :  { %v181_v5 = vsel %vm180_vm9, %v252_v55, %v177_v3 }
 0x225   :  { %199 = vst.msk [vmem:[%s348_s7] sm:$0xf] %vm198_vm7, %v196_v4  ;;  %v183_v6 = vmul.f32 %v181_v5, %v149_v41 }
 0x227   :  { %v189_v7 = vmul.f32 %v245_v58, %v183_v6 }
 0x229   :  { %v195_v8 = vadd.f32 %v246_v61, %v189_v7 }
 0x22b   :  { %v197_v9 = vpack.c.bf16 %v195_v8, %v195_v8 }
 0x22d   :  { %200 = vst.msk [vmem:[%s348_s7 + $0x4] sm:$0xf] %vm198_vm7, %v197_v9 }

// kernel: transformer_encoder.6
= control target key start
LH: loop header
LB: loop body
LE: loop exit
PB: predicated region body
PF: predicated region fallthrough
CT: control target
= control target key end

     0   :  { %s1708_s0 = inlined_call_operand.vmem [shape: bf16[2,8,32], index: 0, kind: input, shape index: {}, may-alias: {0,1}]   ;;  %s1709_s1 = inlined_call_operand.vmem [shape: bf16[2,8,32], index: 1, kind: input, shape index: {}, may-alias: {0,1}]   ;;  %s1710_s2 = inlined_call_operand.vmem [shape: bf16[32,32], index: 2, kind: input, shape index: {}]   ;;  %s1711_s3 = inlined_call_operand.hbm [shape: f32[1,32], index: 3, kind: input, shape index: {}]   ;;  %s1712_s4 = inlined_call_operand.vmem [shape: bf16[32,64], index: 4, kind: input, shape index: {}]   ;;  %s1713_s5 = inlined_call_operand.hbm [shape: f32[1,32], index: 5, kind: input, shape index: {}]   ;;  %s1714_s6 = inlined_call_operand.hbm [shape: bf16[32,32], index: 6, kind: input, shape index: {}]   ;;  %s1715_s7 = inlined_call_operand.hbm [shape: f32[1,32], index: 7, kind: input, shape index: {}]   ;;  %s1716_s8 = inlined_call_operand.hbm [shape: f32[1,32], index: 8, kind: input, shape index: {}]   ;;  %s1717_s9 = inlined_call_operand.hbm [shape: f32[1,32], index: 9, kind: input, shape index: {}]   ;;  %s1718_s10 = inlined_call_operand.vmem [shape: bf16[2,8,32], index: 10, kind: output, shape index: {}]  }
   0x1   :  { %1719 = sst [smem:[#allocation16_spill]] %s1711_s3 }
   0x2   :  { %1720 = sst [smem:[#allocation17_spill]] %s1713_s5 }
   0x3   :  { %15 = vsyncpa [#allocation3], 0 }
   0x4   :  { %16 = vsyncpa [#allocation5], 0 }
   0x5   :  { %17 = vsyncpa [#allocation8], 0 }
   0x6   :  { %18 = vsyncpa [#allocation11], 0  ;;  %s1542_s13 = smov 0   ;;  %s1544_s14 = smov 0  }
   0x7   :  { %s1546_s15 = smov 0  }
   0x8 LB: > { %s1721_s5 = sld [smem:[#allocation17_spill]]  ;;  %s1060_s19 = sadd.s32 4294967295, %s1465_s15   ;;  %s1465_s15 = sphi %s1546_s15, %s24_s15   ;;  %s1461_s14 = sphi %s1544_s14, %s1727_s14   ;;  %s1457_s13 = sphi %s1542_s13, %s1726_s13  }
   0x9   : > { %p1062_p0 = scmp.ge.s32.totalorder %s1465_s15, 1  ;;  %p291_p1 = scmp.lt.s32.totalorder %s1465_s15, 3 }
   0xa   : > { %p1563_p2 = scmp.eq.s32.totalorder %s1060_s19, 0  ;;  %s1467_s22 = smov [#allocation4]  }
   0xb   : > { %p1567_p3 = pnand %p1062_p0, %p291_p1  ;;  %s323_s23 = sshll.u32 %s1467_s22, 4  ;;  %s324_s23 = int_to_ptr.vmem [resolvable:$true] %s323_s23 }
   0xc   : > { %s347_s26 = sshll.u32 %s1715_s7, 4  ;;  %s1468_s28 = smov [#allocation7]   ;;  %s348_s26 = int_to_ptr.hbm [resolvable:$true] %s347_s26 }
   0xd   : > { %p1147_p4 = pneg %p1567_p3  ;;  %s349_s29 = sshll.u32 %s1468_s28, 4  ;;  %s350_s29 = int_to_ptr.vmem [resolvable:$true] %s349_s29 }
   0xe   : > { %s321_s18 = sshll.u32 %s1721_s5, 4  ;;  %s36_s30 = sadd.s32 1, %s1461_s14  ;;  %s322_s18 = int_to_ptr.hbm [resolvable:$true] %s321_s18 }
   0xf   : > { %p1578_p5 = pnand %p1563_p2, %p1147_p4  ;;  %p38_p6 = scmp.ge.s32.totalorder %s36_s30, 2 }
  0x10   : > { %s1725_s3 = sld [smem:[#allocation16_spill]]  ;;  %s1469_s17 = smov [#allocation2]  }
  0x11   : > { %1153 = dma.hbm_to_vmem [thread:$0]  (!%p1578_p5), %s322_s18, 16, %s324_s23, [#allocation5]  }
  0x12   : > { %1159 = dma.hbm_to_vmem [thread:$0]  (!%p1578_p5), %s348_s26, 16, %s350_s29, [#allocation8]  }
  0x13   : > { %s1729_s30 = smov (%p38_p6, %s36_s30), 0  ;;  %s308_s19 = sshll.u32 %s1469_s17, 4  ;;  %s309_s19 = int_to_ptr.vmem [resolvable:$true] %s308_s19 }
  0x14   : > { %s332_s25 = sshll.u32 %s1714_s6, 4  ;;  %s1470_s18 = smov [#allocation6]   ;;  %s333_s25 = int_to_ptr.hbm [resolvable:$true] %s332_s25 }
  0x15   : > { %s334_s23 = sshll.u32 %s1470_s18, 4  ;;  %s359_s29 = sshll.u32 %s1716_s8, 4  ;;  %s335_s23 = int_to_ptr.vmem [resolvable:$true] %s334_s23  ;;  %s360_s29 = int_to_ptr.hbm [resolvable:$true] %s359_s29 }
  0x16   : > { %s306_s16 = sshll.u32 %s1725_s3, 4  ;;  %s1471_s11 = smov 64   ;;  %s307_s16 = int_to_ptr.hbm [resolvable:$true] %s306_s16 }
  0x17   : > { %1150 = dma.hbm_to_vmem [thread:$0]  (!%p1578_p5), %s307_s16, 16, %s309_s19, [#allocation3]  }
  0x18   : > { %s1472_s12 = smov 4   ;;  %s1473_s17 = smov [#allocation9]  }
  0x19   : > { %1156 = dma.hbm_to_vmem [thread:$0]  (!%p1578_p5), %s333_s25, 256, %s335_s23, [#allocation5], %s1471_s11, %s1471_s11, %s1472_s12  }
  0x1a   : > { %s361_s22 = sshll.u32 %s1473_s17, 4  ;;  %s371_s5 = sshll.u32 %s1717_s9, 4  ;;  %s362_s22 = int_to_ptr.vmem [resolvable:$true] %s361_s22  ;;  %s372_s5 = int_to_ptr.hbm [resolvable:$true] %s371_s5 }
  0x1b   : > { %1162 = dma.hbm_to_vmem [thread:$0]  (!%p1578_p5), %s360_s29, 16, %s362_s22, [#allocation8]  }
  0x1c   : > { %s1474_s16 = smov [#allocation10]   ;;  %403 = sbr.rel (%p1567_p3) target bundleno = 1652 (0x674), region = 60 }
  0x1d   : > { %s373_s19 = sshll.u32 %s1474_s16, 4  ;;  %s374_s19 = int_to_ptr.vmem [resolvable:$true] %s373_s19 }
  0x1e   : > { %1165 = dma.hbm_to_vmem [thread:$0]  (!%p1578_p5), %s372_s5, 16, %s374_s19, [#allocation11]  }
  0x21   : > { %1440 = dma.done.wait (%p1563_p2), [#allocation3], 16  }
  0x22   : > { %1442 = vsyncadd (%p1563_p2), [#allocation3], 4294967280 }
  0x23   : > { %1444 = dma.done.wait (%p1563_p2), [#allocation5], 272  }
  0x24   : > { %1446 = vsyncadd (%p1563_p2), [#allocation5], 4294967024 }
  0x25   : > { %1448 = dma.done.wait (%p1563_p2), [#allocation8], 32  }
  0x26   : > { %1450 = vsyncadd (%p1563_p2), [#allocation8], 4294967264 }
  0x27   : > { %1452 = dma.done.wait (%p1563_p2), [#allocation11], 16  }
  0x28   : > { %1454 = vsyncadd (%p1563_p2), [#allocation11], 4294967280  ;;  %p475_p7 = scmp.lt.s32.totalorder %s1457_s13, 1  ;;  %v1118_v0 = vld [vmem:[%s1710_s2 + $0x8] sm:$0xff]  ;;  %v1117_v2 = vld [vmem:[%s1710_s2] sm:$0xff]  ;;  %vm516_vm0 = vcmask 261120  }
  0x29   : > { %v1120_v1 = vld [vmem:[%s1712_s4 + $0x8] sm:$0xff]  ;;  %526 = vmatpush.bf16.msra.mxu0 %v1118_v0  ;;  %v1119_v3 = vld [vmem:[%s1712_s4] sm:$0xff]  ;;  %vm575_vm1 = vcmask 64512   ;;  %s1475_s22 = smov 120   ;;  %s1476_s24 = smov 112   ;;  %vm615_vm2 = vcmask 1043456  }
  0x2a   : > { %s1731_s13 = smov (!%p475_p7, %s1457_s13), 1  ;;  %558 = vmatpush.bf16.msra.mxu1 %v1120_v1  ;;  %v1222_v6 = vld [vmem:[#allocation2] ss:$0 sm:$0xff]  ;;  %s1477_s16 = smov 104   ;;  %v1223_v26 = vld [vmem:[#allocation4] ss:$0 sm:$0xff] }
  0x2b   : > { %s1635_s25 = sshll.u32 %s1731_s13, 2  ;;  %s1478_s19 = smov 32   ;;  %vm828_vm3 = vcmask 130048   ;;  %vm831_vm4 = vcmask 195584   ;;  %vm911_vm9 = vcmask 257024  }
  0x2c   : > { %s481_s11 = scalar_lea.vmem %s1708_s0, %s1635_s25  ;;  %s485_s13 = scalar_lea.vmem %s1709_s1, %s1635_s25 }
  0x2d   : > { %527 = vmatpush.bf16.msra.mxu0 %v1117_v2  ;;  %v1651_v4 = vld [vmem:[%s481_s11] sm:$0xf]  ;;  %s1479_s3 = smov 96   ;;  %s1480_s5 = smov 88  }
  0x2e   : > { %559 = vmatpush.bf16.msra.mxu1 %v1119_v3  ;;  %v495_v5 = vld [vmem:[%s485_s13] sm:$0xf]  ;;  %s1481_s21 = smov 80   ;;  %s1482_s27 = smov 72  }
  0x2f   : > { %s1483_s18 = smov 8   ;;  %s1484_s23 = smov 16  }
  0x30   : > { %1088 = vmatmul.msk.bf16.vlgmr.msra.gmra.mxu0 %vm516_vm0, %v1651_v4  ;;  %s1485_s20 = smov 24   ;;  %s492_s29 = scalar_lea.vmem %s1718_s10, %s1635_s25 }
  0x31   : > { %1097 = vmatmul.msk.bf16.vlgmr.msra.gmra.mxu1 %vm516_vm0, %v495_v5 }
  0xad   : > { %v529_v7 = vpop.f32.mrf.mxu0 }
  0xae   : > { %v561_v8 = vpop.f32.mrf.mxu1  ;;  %v530_v9 = vadd.f32 %v1222_v6, %v529_v7 }
  0xaf   : > { %v573_v10 = vpack.c.bf16 %v561_v8, %v561_v8 }
  0xb0   : > { %v572_v11 = vpack.c.bf16 %v530_v9, %v530_v9 }
  0xb1   : > { %v580_v12 = vsel %vm575_vm1, %v573_v10, 0  ;;  %v639_v13 = vunpack.c.l.b16 %v573_v10 }
  0xb2   : > { %589 = vmatpush.bf16.xpose.msra.mxu2 %v580_v12  ;;  %v634_v15 = vunpack.c.l.b16 %v572_v11 }
  0xb3   : > { %v640_v14 = vpack.c.b16 %v639_v13, %v639_v13 }
  0xb4   : > { %v635_v18 = vpack.c.b16 %v634_v15, %v634_v15 }
  0xb5   : > { %641 = vrot.lane.b32.xlu2 %v640_v14, %s1475_s22  ;;  %v531_v16 = vpop.f32.mrf.mxu0 }
  0xb6   : > { %v563_v17 = vpop.f32.mrf.mxu1 }
  0xb9   : > { %1098 = vmatmul.msk.bf16.vlgmr.msra.gmra.mxu2 %vm575_vm1, %v572_v11 }
  0xbd   : > { %636 = vrot.lane.b32.xlu2 %v635_v18, %s1475_s22 }
  0xc5   : > { %698 = vrot.lane.b32.xlu2 %v640_v14, %s1476_s24 }
  0xcd   : > { %755 = vrot.lane.b32.xlu2 %v640_v14, %s1477_s16 }
  0xd5   : > { %753 = vrot.lane.b32.xlu2 %v635_v18, %s1477_s16 }
 0x10f   : > { %v642_v19 = vpop.permute.xlu2 %641 }
 0x110   : > { %v647_v45 = vsel %vm575_vm1, %v642_v19, 0 }
 0x117   : > { %v637_v20 = vpop.permute.xlu2 %636 }
 0x11f   : > { %v699_v21 = vpop.permute.xlu2 %698 }
 0x120   : > { %v704_v22 = vsel %vm575_vm1, %v699_v21, 0 }
 0x121   : > { %713 = vmatpush.bf16.xpose.msrb.mxu1 %v704_v22 }
 0x127   : > { %v756_v44 = vpop.permute.xlu2 %755 }
 0x128   : > { %v761_v48 = vsel %vm575_vm1, %v756_v44, 0  ;;  %v1122_v44 = vld [vmem:[#allocation6 + $0x8] sm:$0xff] }
 0x129   : > { %862 = vmatpush.bf16.msra.mxu1 %v1122_v44 }
 0x12f   : > { %v754_v50 = vpop.permute.xlu2 %753 }
 0x13c   : > { %v591_v23 = vpop.f32.mrf.mxu2 }
 0x13d   : > { %v595_v24 = vsel %vm575_vm1, %v591_v23, -inf }
 0x13e   : > { %596 = vmax.xlane.f32.xlu0 %v595_v24 }
 0x144   : > { %v593_v25 = vpop.f32.mrf.mxu2 }
 0x152   : > { %568 = vrot.lane.b32.xlu0 %v1223_v26, %s1478_s19 }
 0x15a   : > { %696 = vrot.lane.b32.xlu0 %v635_v18, %s1476_s24 }
 0x1b1   : > { %v597_v27 = vpop.xlane.xlu0 %596 }
 0x1b2   : > { %v598_v28 = vsub.f32 %v591_v23, %v597_v27 }
 0x1b4   : > { %v599_v29 = vmul.f32 1.442695, %v598_v28 }
 0x1b6   : > { %1227 = vpow2.f32 %v599_v29 }
 0x1bc   : > { %v1228_v30 = vpop.eup %1227 }
 0x1bd   : > { %v601_v31 = vsel %vm575_vm1, %v1228_v30, 0.0 }
 0x1be   : > { %602 = vadd.xlane.f32.xlu1 %v601_v31 }
 0x1c4   : > { %v569_v32 = vpop.permute.xlu0 %568 }
 0x1c5   : > { %v571_v33 = vadd.f32 %v569_v32, %v561_v8 }
 0x1c7   : > { %v574_v35 = vpack.c.bf16 %v571_v33, %v571_v33 }
 0x1c9   : > { %v608_v36 = vunpack.c.l.b16 %v574_v35 }
 0x1cb   : > { %v1662_v37 = vpack.c.b16 %v608_v36, %v608_v36 }
 0x1cc   : > { %v697_v34 = vpop.permute.xlu0 %696 }
 0x1cd   : > { %1102 = vmatmul.msk.bf16.vlgmr.msrb.gmra.mxu1 %vm575_vm1, %v697_v34 }
 0x1d7   : > { %610 = vrot.lane.b32.xlu1 %v1662_v37, %s1479_s3 }
 0x231   : > { %v603_v38 = vpop.xlane.xlu1 %602 }
 0x232   : > { %1229 = vrcp.f32 %v603_v38 }
 0x238   : > { %v1230_v39 = vpop.eup %1229 }
 0x239   : > { %v605_v40 = vmul.f32 %v1230_v39, %v1228_v30 }
 0x23b   : > { %v606_v47 = vpack.c.bf16 %v605_v40, %v605_v40 }
 0x249   : > { %v611_v41 = vpop.permute.xlu1 %610 }
 0x24a   : > { %v715_v42 = vpop.f32.mrf.mxu1  ;;  %v617_v43 = vsel %vm615_vm2, %v611_v41, 0 }
 0x24b   : > { %626 = vmatpush.bf16.msra.mxu3 %v617_v43  ;;  %v719_v46 = vsel %vm575_vm1, %v715_v42, -inf }
 0x24c   : > { %720 = vmax.xlane.f32.xlu0 %v719_v46 }
 0x24e   : > { %1099 = vmatmul.msk.bf16.vlgmr.msra.gmra.mxu3 %vm575_vm1, %v606_v47 }
 0x24f   : > { %656 = vmatpush.bf16.xpose.msrb.mxu3 %v647_v45  ;;  %v1121_v45 = vld [vmem:[#allocation6] sm:$0xff] }
 0x250   : > { %863 = vmatpush.bf16.msra.mxu1 %v1121_v45 }
 0x252   : > { %v717_v49 = vpop.f32.mrf.mxu1 }
 0x257   : > { %770 = vmatpush.bf16.xpose.msra.mxu3 %v761_v48 }
 0x25e   : > { %1100 = vmatmul.msk.bf16.vlgmr.msrb.gmra.mxu3 %vm575_vm1, %v637_v20 }
 0x260   : > { %674 = vrot.lane.b32.xlu0 %v1662_v37, %s1480_s5 }
 0x26e   : > { %1104 = vmatmul.msk.bf16.vlgmr.msra.gmra.mxu3 %vm575_vm1, %v754_v50 }
 0x2bf   : > { %v721_v51 = vpop.xlane.xlu0 %720 }
 0x2c0   : > { %v722_v58 = vsub.f32 %v715_v42, %v721_v51 }
 0x2c2   : > { %v723_v60 = vmul.f32 1.442695, %v722_v58 }
 0x2c4   : > { %1231 = vpow2.f32 %v723_v60  ;;  %v1486_v60 = vmov 32.0  }
 0x2ca   : > { %v1232_v63 = vpop.eup %1231 }
 0x2cb   : > { %v725_v1 = vsel %vm575_vm1, %v1232_v63, 0.0 }
 0x2d1   : > { %v1673_v52 = vpop.f32.mrf.mxu3 }
 0x2d2   : > { %v675_v53 = vpop.permute.xlu0 %674  ;;  %v632_v47 = vpack.c.bf16 %v1673_v52, %v1673_v52 }
 0x2d3   : > { %v680_v54 = vsel %vm615_vm2, %v675_v53, 0 }
 0x2d4   : > { %689 = vmatpush.bf16.msrb.mxu0 %v680_v54  ;;  %v1224_v54 = vld [vmem:[#allocation7] ss:$0 sm:$0xff] }
 0x2d9   : > { %v630_v55 = vpop.f32.mrf.mxu3 }
 0x2da   : > { %v869_v55 = vunpack.c.l.bf16 %v1651_v4 }
 0x2e1   : > { %v658_v56 = vpop.f32.mrf.mxu3 }
 0x2e2   : > { %v662_v57 = vsel %vm575_vm1, %v658_v56, -inf }
 0x2e3   : > { %663 = vmax.xlane.f32.xlu1 %v662_v57 }
 0x2e9   : > { %v660_v59 = vpop.f32.mrf.mxu3 }
 0x2f1   : > { %v772_v61 = vpop.f32.mrf.mxu3 }
 0x2f2   : > { %v776_v62 = vsel %vm575_vm1, %v772_v61, -inf }
 0x2f3   : > { %777 = vmax.xlane.f32.xlu2 %v776_v62 }
 0x2f9   : > { %v774_v0 = vpop.f32.mrf.mxu3 }
 0x2fb   : > { %726 = vadd.xlane.f32.xlu2 %v725_v1 }
 0x313   : > { %731 = vrot.lane.b32.xlu2 %v1662_v37, %s1481_s21 }
 0x356   : > { %v664_v2 = vpop.xlane.xlu1 %663 }
 0x357   : > { %v665_v3 = vsub.f32 %v658_v56, %v664_v2 }
 0x359   : > { %v666_v5 = vmul.f32 1.442695, %v665_v3 }
 0x35b   : > { %1233 = vpow2.f32 %v666_v5 }
 0x361   : > { %v1234_v6 = vpop.eup %1233 }
 0x362   : > { %v668_v7 = vsel %vm575_vm1, %v1234_v6, 0.0 }
 0x363   : > { %669 = vadd.xlane.f32.xlu1 %v668_v7 }
 0x366   : > { %v778_v8 = vpop.xlane.xlu2 %777 }
 0x367   : > { %v779_v9 = vsub.f32 %v772_v61, %v778_v8 }
 0x369   : > { %v780_v10 = vmul.f32 1.442695, %v779_v9 }
 0x36b   : > { %1235 = vpow2.f32 %v780_v10 }
 0x36e   : > { %v727_v11 = vpop.xlane.xlu2 %726 }
 0x36f   : > { %1237 = vrcp.f32 %v727_v11 }
 0x371   : > { %v1236_v12 = vpop.eup %1235 }
 0x372   : > { %v782_v13 = vsel %vm575_vm1, %v1236_v12, 0.0 }
 0x373   : > { %783 = vadd.xlane.f32.xlu1 %v782_v13 }
 0x375   : > { %v1238_v14 = vpop.eup %1237 }
 0x376   : > { %v729_v15 = vmul.f32 %v1238_v14, %v1232_v63  ;;  %v732_v16 = vpop.permute.xlu2 %731 }
 0x377   : > { %v737_v17 = vsel %vm615_vm2, %v732_v16, 0 }
 0x378   : > { %746 = vmatpush.bf16.msrb.mxu2 %v737_v17  ;;  %v730_v18 = vpack.c.bf16 %v729_v15, %v729_v15  ;;  %v1225_v17 = vld [vmem:[#allocation9] ss:$0 sm:$0xff] }
 0x37b   : > { %1103 = vmatmul.msk.bf16.vlgmr.msrb.gmra.mxu2 %vm575_vm1, %v730_v18 }
 0x38c   : > { %788 = vrot.lane.b32.xlu1 %v1662_v37, %s1482_s27 }
 0x3d6   : > { %v670_v19 = vpop.xlane.xlu1 %669 }
 0x3d7   : > { %1239 = vrcp.f32 %v670_v19  ;;  %v1226_v19 = vld [vmem:[#allocation10] ss:$0 sm:$0xff] }
 0x3dd   : > { %v1240_v20 = vpop.eup %1239 }
 0x3de   : > { %v672_v21 = vmul.f32 %v1240_v20, %v1234_v6 }
 0x3e0   : > { %v673_v22 = vpack.c.bf16 %v672_v21, %v672_v21 }
 0x3e2   : > { %1101 = vmatmul.msk.bf16.vlgmr.msrb.gmra.mxu0 %vm575_vm1, %v673_v22 }
 0x3e6   : > { %v784_v23 = vpop.xlane.xlu1 %783 }
 0x3e7   : > { %1241 = vrcp.f32 %v784_v23 }
 0x3e8   : > { %1243 = vrcp.f32 %v1486_v60 }
 0x3ed   : > { %v1242_v24 = vpop.eup %1241 }
 0x3ee   : > { %v786_v25 = vmul.f32 %v1242_v24, %v1236_v12  ;;  %v1244_v61 = vpop.eup %1243 }
 0x3ef   : > { %v875_v62 = vmul.f32 32.0, %v1244_v61  ;;  %vm879_vm5 = vweird.f32 %v1244_v61 }
 0x3f0   : > { %v787_v29 = vpack.c.bf16 %v786_v25, %v786_v25 }
 0x3f1   : > { %v876_v63 = vsub.f32 1.0, %v875_v62 }
 0x3f3   : > { %v877_v0 = vmul.f32 %v1244_v61, %v876_v63 }
 0x3f5   : > { %v878_v1 = vadd.f32 %v1244_v61, %v877_v0 }
 0x3f7   : > { %v880_v2 = vsel %vm879_vm5, %v1244_v61, %v878_v1 }
 0x3fe   : > { %v789_v26 = vpop.permute.xlu1 %788  ;;  %v748_v27 = vpop.f32.mrf.mxu2 }
 0x3ff   : > { %v794_v28 = vsel %vm615_vm2, %v789_v26, 0  ;;  %v752_v34 = vpack.c.bf16 %v748_v27, %v748_v27 }
 0x400   : > { %803 = vmatpush.bf16.msra.mxu0 %v794_v28 }
 0x401   : > { %v816_v37 = vunpack.c.l.b16 %v752_v34 }
 0x403   : > { %1105 = vmatmul.msk.bf16.vlgmr.msra.gmra.mxu0 %vm575_vm1, %v787_v29  ;;  %v817_v38 = vpack.c.b16 %v816_v37, %v816_v37 }
 0x406   : > { %v750_v30 = vpop.f32.mrf.mxu2 }
 0x45f   : > { %v691_v31 = vpop.f32.mrf.mxu0 }
 0x460   : > { %v695_v32 = vpack.c.bf16 %v691_v31, %v691_v31 }
 0x462   : > { %v811_v33 = vunpack.c.l.b16 %v695_v32 }
 0x464   : > { %v812_v35 = vpack.c.b16 %v811_v33, %v811_v33 }
 0x466   : > { %813 = vrot.lane.b32.xlu0 %v812_v35, %s1483_s18 }
 0x467   : > { %v693_v36 = vpop.f32.mrf.mxu0 }
 0x46e   : > { %818 = vrot.lane.b32.xlu0 %v817_v38, %s1484_s23 }
 0x480   : > { %v805_v39 = vpop.f32.mrf.mxu0 }
 0x481   : > { %v809_v40 = vpack.c.bf16 %v805_v39, %v805_v39 }
 0x483   : > { %v821_v41 = vunpack.c.l.b16 %v809_v40 }
 0x485   : > { %v822_v42 = vpack.c.b16 %v821_v41, %v821_v41 }
 0x487   : > { %823 = vrot.lane.b32.xlu2 %v822_v42, %s1485_s20 }
 0x488   : > { %v807_v43 = vpop.f32.mrf.mxu0 }
 0x4d8   : > { %v814_v46 = vpop.permute.xlu0 %813 }
 0x4d9   : > { %v827_v48 = vsel %vm575_vm1, %v632_v47, %v814_v46 }
 0x4e0   : > { %v819_v49 = vpop.permute.xlu0 %818 }
 0x4e1   : > { %v830_v50 = vsel %vm828_vm3, %v827_v48, %v819_v49  ;;  %v824_v51 = vpop.permute.xlu2 %823 }
 0x4e2   : > { %v833_v53 = vsel %vm831_vm4, %v830_v50, %v824_v51 }
 0x4e3   : > { %1114 = vmatmul.msk.bf16.vlgmr.msra.gmra.mxu1 %vm516_vm0, %v833_v53 }
 0x560   : > { %v865_v56 = vpop.f32.mrf.mxu1 }
 0x561   : > { %v866_v57 = vadd.f32 %v1224_v54, %v865_v56 }
 0x563   : > { %v870_v58 = vadd.f32 %v869_v55, %v866_v57 }
 0x565   : > { %v871_v59 = vsel %vm516_vm0, %v870_v58, 0.0 }
 0x566   : > { %872 = vadd.xlane.f32.xlu0 %v871_v59 }
 0x568   : > { %v867_v52 = vpop.f32.mrf.mxu1 }
 0x5d9   : > { %v873_v3 = vpop.xlane.xlu0 %872 }
 0x5da   : > { %v881_v5 = vmul.f32 %v880_v2, %v873_v3 }
 0x5dc   : > { %v882_v6 = vsub.f32 %v870_v58, %v881_v5 }
 0x5de   : > { %v883_v4 = vmul.f32 %v882_v6, %v882_v6 }
 0x5e0   : > { %v884_v7 = vsel %vm516_vm0, %v883_v4, 0.0 }
 0x5e1   : > { %885 = vadd.xlane.f32.xlu1 %v884_v7 }
 0x654   : > { %v886_v8 = vpop.xlane.xlu1 %885 }
 0x655   : > { %v887_v9 = vmul.f32 %v886_v8, %v880_v2 }
 0x657   : > { %v888_v10 = vadd.f32 1e-05, %v887_v9 }
 0x659   : > { %1245 = vrsqrt.f32 %v888_v10  ;;  %vm895_vm7 = vweird.f32 %v888_v10 }
 0x65f   : > { %v1246_v11 = vpop.eup %1245 }
 0x660   : > { %v890_v12 = vmul.f32 %v1246_v11, %v888_v10  ;;  %vm896_vm6 = vweird.f32 %v1246_v11 }
 0x661   : > { %vm897_vm8 = vmor %vm895_vm7, %vm896_vm6 }
 0x662   : > { %v891_v13 = vmul.f32 %v1246_v11, %v890_v12 }
 0x664   : > { %v892_v14 = vmul.f32 0.5, %v891_v13 }
 0x666   : > { %v893_v15 = vsub.f32 1.5, %v892_v14 }
 0x668   : > { %v894_v16 = vmul.f32 %v1246_v11, %v893_v15 }
 0x66a   : > { %v898_v18 = vsel %vm897_vm8, %v1246_v11, %v894_v16 }
 0x66b   : > { %v899_v20 = vmul.f32 %v898_v18, %v882_v6 }
 0x66d   : > { %v904_v21 = vmul.f32 %v1225_v17, %v899_v20 }
 0x66f   : > { %v909_v22 = vadd.f32 %v1226_v19, %v904_v21 }
 0x671   : > { %v910_v23 = vpack.c.bf16 %v909_v22, %v909_v22 }
 0x673   : > { %912 = vst.msk [vmem:[%s492_s29] sm:$0xf] %vm911_vm9, %v910_v23 }
 0x674 PF: > { %s24_s15 = sadd.s32 1, %s1465_s15   ;;  %s1726_s13 = smov %s1461_s14 }
 0x675   : > { %p21_p8 = scmp.ge.s32.totalorder %s24_s15, 4   ;;  %s1727_s14 = smov %s1729_s30 }
 0x677   :  { %23 = sbr.rel (!%p21_p8) target bundleno = 8 (0x8), region = 118 }
 0x67c   :  { %938 = vsyncpa [#allocation3], 1 }
 0x67d   :  { %940 = vsyncpa [#allocation3 + $0x1], 1 }
 0x67e   :  { %941 = vsyncpa [#allocation5], 1 }
 0x67f   :  { %942 = vsyncpa [#allocation8], 1 }
 0x680   :  { %943 = vsyncpa [#allocation11], 1 }

</bundles_post_ra>
